<compile_context>
chip_gen: v5e
topology: v5e:2x2
jax: 0.10.0
libtpu: 0.0.40
codegen_flags: <defaults>
</compile_context>

<pallas_src>
import functools
import math

import jax
import jax.numpy as jnp
from jax import lax
from jax.experimental import pallas as pl
from jax.experimental.pallas import tpu as pltpu

# ----------------------------- config ---------------------------------------
CFG = dict(
    vocab_size=100,
    hidden=32,
    num_layers=2,
    num_heads=4,
    intermediate=64,
    max_pos=16,
    type_vocab=2,
    num_labels=2,
    ln_eps=1e-12,
)

_VMEM = pl.BlockSpec(memory_space=pltpu.MemorySpace.VMEM)


# ----------------------------- fused Pallas kernel ---------------------------
def _bert_kernel(x_ref, mask_ref,
                 eg_ref, eb_ref,
                 qkvw_ref, qkvb_ref, ow_ref, ob_ref, g1_ref, b1_ref,
                 iw_ref, ib_ref, dw_ref, db_ref, g2_ref, b2_ref,
                 pw_ref, pb_ref, cw_ref, cb_ref,
                 o_ref, *, num_layers, num_heads, B, S, eps):
    H = x_ref.shape[1]
    dH = H // num_heads
    scale = 1.0 / math.sqrt(dH)

    def layer_norm(x, g, b):
        mu = jnp.mean(x, axis=-1, keepdims=True)
        var = jnp.mean((x - mu) ** 2, axis=-1, keepdims=True)
        return (x - mu) * lax.rsqrt(var + eps) * g + b

    def gelu(y):
        # TODO(synk): HF BERT uses exact erf-GELU; tanh approximation used here.
        return 0.5 * y * (1.0 + jnp.tanh(0.7978845608028654 * (y + 0.044715 * y * y * y)))

    # additive attention mask, [B, S]
    amask = (1.0 - mask_ref[...]) * -10000.0

    # embedding layernorm (no residual -> no zeros buffer / extra DMA)
    x = layer_norm(x_ref[...], eg_ref[...], eb_ref[...])            # [B*S, H]

    for l in range(num_layers):                                     # static unroll
        # fused QKV projection: one [B*S, 3H] MXU matmul instead of three [B*S, H]
        qkv = jnp.dot(x, qkvw_ref[l], preferred_element_type=jnp.float32) + qkvb_ref[l]
        q = qkv[:, 0:H]
        k = qkv[:, H:2 * H]
        v = qkv[:, 2 * H:3 * H]

        # multi-head attention via static slicing: stays VMEM/vreg resident
        ctx_batches = []
        for b in range(B):
            rows = slice(b * S, (b + 1) * S)
            qb, kb, vb = q[rows, :], k[rows, :], v[rows, :]         # [S, H]
            mb = amask[b:b + 1, :]                                   # [1, S]
            head_ctx = []
            for h in range(num_heads):
                cols = slice(h * dH, (h + 1) * dH)
                # q @ k^T without an explicit transpose (contract last dims)
                s = lax.dot_general(qb[:, cols], kb[:, cols],
                                    dimension_numbers=(((1,), (1,)), ((), ())),
                                    preferred_element_type=jnp.float32)
                s = s * scale + mb                                   # [S, S]
                s = s - jnp.max(s, axis=-1, keepdims=True)
                p = jnp.exp(s)
                p = p * pl.reciprocal(jnp.sum(p, axis=-1, keepdims=True), approx=True)
                head_ctx.append(jnp.dot(p, vb[:, cols],
                                        preferred_element_type=jnp.float32))
            ctx_batches.append(jnp.concatenate(head_ctx, axis=-1))   # [S, H]
        ctx = jnp.concatenate(ctx_batches, axis=0)                   # [B*S, H]

        attn_out = jnp.dot(ctx, ow_ref[l], preferred_element_type=jnp.float32) + ob_ref[l]
        x = layer_norm(attn_out + x, g1_ref[l], b1_ref[l])

        inter = gelu(jnp.dot(x, iw_ref[l], preferred_element_type=jnp.float32) + ib_ref[l])
        ffn = jnp.dot(inter, dw_ref[l], preferred_element_type=jnp.float32) + db_ref[l]
        x = layer_norm(ffn + x, g2_ref[l], b2_ref[l])

    # pooler on the [CLS] token of each sequence (row b*S), then classifier
    cls_rows = jnp.concatenate([x[b * S:b * S + 1, :] for b in range(B)], axis=0)  # [B, H]
    pooled = jnp.tanh(jnp.dot(cls_rows, pw_ref[...], preferred_element_type=jnp.float32)
                      + pb_ref[...])
    logits = jnp.dot(pooled, cw_ref[...], preferred_element_type=jnp.float32) + cb_ref[...]
    o_ref[...] = logits.astype(o_ref.dtype)


# ----------------------------- params ----------------------------------------
def init_params(key, cfg):
    H, I, L = cfg["hidden"], cfg["intermediate"], cfg["num_layers"]

    def normal(k, shape):
        return 0.02 * jax.random.normal(k, shape, dtype=jnp.float32)

    keys = iter(jax.random.split(key, 64))
    return {
        "word_emb": normal(next(keys), (cfg["vocab_size"], H)),
        "pos_emb": normal(next(keys), (cfg["max_pos"], H)),
        "type_emb": normal(next(keys), (cfg["type_vocab"], H)),
        # LayerNorm / bias params stored pre-shaped (2-D, layer-stacked): no
        # per-call reshapes, kernel indexes the leading layer axis statically.
        "emb_ln_g": jnp.ones((1, H), jnp.float32),
        "emb_ln_b": jnp.zeros((1, H), jnp.float32),
        "qkv_w": normal(next(keys), (L, H, 3 * H)),          # fused Q|K|V
        "qkv_b": jnp.zeros((L, 1, 3 * H), jnp.float32),
        "o_w": normal(next(keys), (L, H, H)),
        "o_b": jnp.zeros((L, 1, H), jnp.float32),
        "ln1_g": jnp.ones((L, 1, H), jnp.float32),
        "ln1_b": jnp.zeros((L, 1, H), jnp.float32),
        "i_w": normal(next(keys), (L, H, I)),
        "i_b": jnp.zeros((L, 1, I), jnp.float32),
        "do_w": normal(next(keys), (L, I, H)),
        "do_b": jnp.zeros((L, 1, H), jnp.float32),
        "ln2_g": jnp.ones((L, 1, H), jnp.float32),
        "ln2_b": jnp.zeros((L, 1, H), jnp.float32),
        "pooler_w": normal(next(keys), (H, H)),
        "pooler_b": jnp.zeros((1, H), jnp.float32),
        "cls_w": normal(next(keys), (H, cfg["num_labels"])),
        "cls_b": jnp.zeros((1, cfg["num_labels"]), jnp.float32),
    }


# ----------------------------- forward ----------------------------------------
def bert_forward(params, inputs, lens, mask, cfg):
    # `lens` is unused by the reference forward (mask already encodes padding).
    del lens
    B, S = inputs.shape
    H = cfg["hidden"]

    # Embedding gathers are plain-JAX glue; token_type_ids == 0; dropout = identity.
    emb = (params["word_emb"][inputs]
           + params["pos_emb"][jnp.arange(S)][None, :, :]
           + params["type_emb"][0][None, None, :])
    x = emb.reshape(B * S, H).astype(jnp.float32)

    kernel = functools.partial(
        _bert_kernel,
        num_layers=cfg["num_layers"], num_heads=cfg["num_heads"],
        B=B, S=S, eps=cfg["ln_eps"])

    return pl.pallas_call(
        kernel,
        out_shape=jax.ShapeDtypeStruct((B, cfg["num_labels"]), jnp.float32),
        in_specs=[_VMEM] * 20,
        out_specs=_VMEM,
    )(x, mask.astype(jnp.float32),
      params["emb_ln_g"], params["emb_ln_b"],
      params["qkv_w"], params["qkv_b"],
      params["o_w"], params["o_b"],
      params["ln1_g"], params["ln1_b"],
      params["i_w"], params["i_b"],
      params["do_w"], params["do_b"],
      params["ln2_g"], params["ln2_b"],
      params["pooler_w"], params["pooler_b"],
      params["cls_w"], params["cls_b"])


# ----------------------------- main ------------------------------------------
if __name__ == "__main__":
    B, S = 2, 8
    key = jax.random.PRNGKey(0)
    k_param, k_ids = jax.random.split(key, 2)

    params = init_params(k_param, CFG)
    input_ids = jax.random.randint(k_ids, (B, S), 0, CFG["vocab_size"], dtype=jnp.int32)
    lens = jnp.array([S, S - 2], dtype=jnp.int32)
    # attention mask: 1 for real tokens, 0 for padding
    mask = (jnp.arange(S)[None, :] < lens[:, None]).astype(jnp.int32)

    logits = bert_forward(params, input_ids, lens, mask, CFG)
    logits = jax.block_until_ready(logits)
    assert logits.shape == (B, CFG["num_labels"])
    print("KERNEL_OK")
</pallas_src>

<mosaic_0001>
module attributes {stable_mosaic.version = 11 : i64} {
  func.func @_bert_kernel(%arg0: memref<16x32xf32, #tpu.memory_space<vmem>>, %arg1: memref<2x8xf32, #tpu.memory_space<vmem>>, %arg2: memref<1x32xf32, #tpu.memory_space<vmem>>, %arg3: memref<1x32xf32, #tpu.memory_space<vmem>>, %arg4: memref<2x32x96xf32, #tpu.memory_space<vmem>>, %arg5: memref<2x1x96xf32, #tpu.memory_space<vmem>>, %arg6: memref<2x32x32xf32, #tpu.memory_space<vmem>>, %arg7: memref<2x1x32xf32, #tpu.memory_space<vmem>>, %arg8: memref<2x1x32xf32, #tpu.memory_space<vmem>>, %arg9: memref<2x1x32xf32, #tpu.memory_space<vmem>>, %arg10: memref<2x32x64xf32, #tpu.memory_space<vmem>>, %arg11: memref<2x1x64xf32, #tpu.memory_space<vmem>>, %arg12: memref<2x64x32xf32, #tpu.memory_space<vmem>>, %arg13: memref<2x1x32xf32, #tpu.memory_space<vmem>>, %arg14: memref<2x1x32xf32, #tpu.memory_space<vmem>>, %arg15: memref<2x1x32xf32, #tpu.memory_space<vmem>>, %arg16: memref<32x32xf32, #tpu.memory_space<vmem>>, %arg17: memref<1x32xf32, #tpu.memory_space<vmem>>, %arg18: memref<32x2xf32, #tpu.memory_space<vmem>>, %arg19: memref<1x2xf32, #tpu.memory_space<vmem>>, %arg20: memref<2x2xf32, #tpu.memory_space<vmem>>) attributes {dimension_semantics = [], scalar_prefetch = 0 : i64, scratch_operands = 0 : i64, tpu.core_type = #tpu.core_type<tc>} {
    %c0 = arith.constant 0 : index
    %c0_0 = arith.constant 0 : index
    %0 = vector.load %arg1[%c0, %c0_0] : memref<2x8xf32, #tpu.memory_space<vmem>>, vector<2x8xf32>
    %cst = arith.constant 1.000000e+00 : f32
    %1 = vector.broadcast %cst : f32 to vector<2x8xf32>
    %2 = arith.subf %1, %0 : vector<2x8xf32>
    %cst_1 = arith.constant -1.000000e+04 : f32
    %3 = vector.broadcast %cst_1 : f32 to vector<2x8xf32>
    %4 = arith.mulf %2, %3 : vector<2x8xf32>
    %c0_2 = arith.constant 0 : index
    %c0_3 = arith.constant 0 : index
    %5 = vector.load %arg0[%c0_2, %c0_3] : memref<16x32xf32, #tpu.memory_space<vmem>>, vector<16x32xf32>
    %c0_4 = arith.constant 0 : index
    %c0_5 = arith.constant 0 : index
    %6 = vector.load %arg2[%c0_4, %c0_5] : memref<1x32xf32, #tpu.memory_space<vmem>>, vector<1x32xf32>
    %c0_6 = arith.constant 0 : index
    %c0_7 = arith.constant 0 : index
    %7 = vector.load %arg3[%c0_6, %c0_7] : memref<1x32xf32, #tpu.memory_space<vmem>>, vector<1x32xf32>
    %cst_8 = arith.constant dense<0.000000e+00> : vector<16xf32>
    %8 = vector.multi_reduction <add>, %5, %cst_8 [1] : vector<16x32xf32> to vector<16xf32>
    %9 = vector.shape_cast %8 : vector<16xf32> to vector<16x1xf32>
    %cst_9 = arith.constant 3.200000e+01 : f32
    %10 = vector.broadcast %cst_9 : f32 to vector<16x1xf32>
    %11 = arith.divf %9, %10 : vector<16x1xf32>
    %12 = vector.broadcast %11 : vector<16x1xf32> to vector<16x32xf32>
    %13 = arith.subf %5, %12 : vector<16x32xf32>
    %14 = arith.mulf %13, %13 : vector<16x32xf32>
    %cst_10 = arith.constant dense<0.000000e+00> : vector<16xf32>
    %15 = vector.multi_reduction <add>, %14, %cst_10 [1] : vector<16x32xf32> to vector<16xf32>
    %16 = vector.shape_cast %15 : vector<16xf32> to vector<16x1xf32>
    %cst_11 = arith.constant 3.200000e+01 : f32
    %17 = vector.broadcast %cst_11 : f32 to vector<16x1xf32>
    %18 = arith.divf %16, %17 : vector<16x1xf32>
    %19 = vector.broadcast %11 : vector<16x1xf32> to vector<16x32xf32>
    %20 = arith.subf %5, %19 : vector<16x32xf32>
    %cst_12 = arith.constant 9.99999996E-13 : f32
    %21 = vector.broadcast %cst_12 : f32 to vector<16x1xf32>
    %22 = arith.addf %18, %21 : vector<16x1xf32>
    %23 = math.rsqrt %22 : vector<16x1xf32>
    %24 = vector.broadcast %23 : vector<16x1xf32> to vector<16x32xf32>
    %25 = arith.mulf %20, %24 : vector<16x32xf32>
    %26 = vector.broadcast %6 : vector<1x32xf32> to vector<16x32xf32>
    %27 = arith.mulf %25, %26 : vector<16x32xf32>
    %28 = vector.broadcast %7 : vector<1x32xf32> to vector<16x32xf32>
    %29 = arith.addf %27, %28 : vector<16x32xf32>
    %c0_13 = arith.constant 0 : index
    %c0_14 = arith.constant 0 : index
    %c0_15 = arith.constant 0 : index
    %30 = vector.load %arg4[%c0_13, %c0_14, %c0_15] : memref<2x32x96xf32, #tpu.memory_space<vmem>>, vector<1x32x96xf32>
    %31 = vector.shape_cast %30 : vector<1x32x96xf32> to vector<32x96xf32>
    %cst_16 = arith.constant dense<0.000000e+00> : vector<16x96xf32>
    %32 = tpu.matmul %29, %31, %cst_16 {dimension_numbers = #tpu.dot_dimension_numbers<[1], [0], [0], [1], [0, 0, 1, 1], [], []>} : vector<16x32xf32>, vector<32x96xf32>, vector<16x96xf32> -> vector<16x96xf32>
    %c0_17 = arith.constant 0 : index
    %c0_18 = arith.constant 0 : index
    %c0_19 = arith.constant 0 : index
    %33 = vector.load %arg5[%c0_17, %c0_18, %c0_19] : memref<2x1x96xf32, #tpu.memory_space<vmem>>, vector<1x1x96xf32>
    %34 = vector.shape_cast %33 : vector<1x1x96xf32> to vector<1x96xf32>
    %35 = vector.broadcast %34 : vector<1x96xf32> to vector<16x96xf32>
    %36 = arith.addf %32, %35 : vector<16x96xf32>
    %37 = vector.extract_strided_slice %36 {offsets = [0, 0], sizes = [16, 32], strides = [1, 1]} : vector<16x96xf32> to vector<16x32xf32>
    %38 = vector.extract_strided_slice %36 {offsets = [0, 32], sizes = [16, 32], strides = [1, 1]} : vector<16x96xf32> to vector<16x32xf32>
    %39 = vector.extract_strided_slice %36 {offsets = [0, 64], sizes = [16, 32], strides = [1, 1]} : vector<16x96xf32> to vector<16x32xf32>
    %40 = vector.extract_strided_slice %37 {offsets = [0, 0], sizes = [8, 32], strides = [1, 1]} : vector<16x32xf32> to vector<8x32xf32>
    %41 = vector.extract_strided_slice %38 {offsets = [0, 0], sizes = [8, 32], strides = [1, 1]} : vector<16x32xf32> to vector<8x32xf32>
    %42 = vector.extract_strided_slice %39 {offsets = [0, 0], sizes = [8, 32], strides = [1, 1]} : vector<16x32xf32> to vector<8x32xf32>
    %43 = vector.extract_strided_slice %4 {offsets = [0, 0], sizes = [1, 8], strides = [1, 1]} : vector<2x8xf32> to vector<1x8xf32>
    %44 = vector.extract_strided_slice %40 {offsets = [0, 0], sizes = [8, 8], strides = [1, 1]} : vector<8x32xf32> to vector<8x8xf32>
    %45 = vector.extract_strided_slice %41 {offsets = [0, 0], sizes = [8, 8], strides = [1, 1]} : vector<8x32xf32> to vector<8x8xf32>
    %cst_20 = arith.constant dense<0.000000e+00> : vector<8x8xf32>
    %46 = tpu.matmul %44, %45, %cst_20 {dimension_numbers = #tpu.dot_dimension_numbers<[1], [1], [0], [0], [0, 0, 1, 0], [], []>} : vector<8x8xf32>, vector<8x8xf32>, vector<8x8xf32> -> vector<8x8xf32>
    %cst_21 = arith.constant 0.353553385 : f32
    %47 = vector.broadcast %cst_21 : f32 to vector<8x8xf32>
    %48 = arith.mulf %46, %47 : vector<8x8xf32>
    %49 = vector.broadcast %43 : vector<1x8xf32> to vector<8x8xf32>
    %50 = arith.addf %48, %49 : vector<8x8xf32>
    %cst_22 = arith.constant dense<0xFF800000> : vector<8xf32>
    %51 = vector.multi_reduction <maximumf>, %50, %cst_22 [1] : vector<8x8xf32> to vector<8xf32>
    %52 = vector.shape_cast %51 : vector<8xf32> to vector<8x1xf32>
    %53 = vector.broadcast %52 : vector<8x1xf32> to vector<8x8xf32>
    %54 = arith.subf %50, %53 : vector<8x8xf32>
    %55 = math.exp %54 : vector<8x8xf32>
    %cst_23 = arith.constant dense<0.000000e+00> : vector<8xf32>
    %56 = vector.multi_reduction <add>, %55, %cst_23 [1] : vector<8x8xf32> to vector<8xf32>
    %57 = vector.shape_cast %56 : vector<8xf32> to vector<8x1xf32>
    %58 = tpu.reciprocal %57 {approx = true} : vector<8x1xf32> -> vector<8x1xf32>
    %59 = vector.broadcast %58 : vector<8x1xf32> to vector<8x8xf32>
    %60 = arith.mulf %55, %59 : vector<8x8xf32>
    %61 = vector.extract_strided_slice %42 {offsets = [0, 0], sizes = [8, 8], strides = [1, 1]} : vector<8x32xf32> to vector<8x8xf32>
    %cst_24 = arith.constant dense<0.000000e+00> : vector<8x8xf32>
    %62 = tpu.matmul %60, %61, %cst_24 {dimension_numbers = #tpu.dot_dimension_numbers<[1], [0], [0], [1], [0, 0, 1, 1], [], []>} : vector<8x8xf32>, vector<8x8xf32>, vector<8x8xf32> -> vector<8x8xf32>
    %63 = vector.extract_strided_slice %40 {offsets = [0, 8], sizes = [8, 8], strides = [1, 1]} : vector<8x32xf32> to vector<8x8xf32>
    %64 = vector.extract_strided_slice %41 {offsets = [0, 8], sizes = [8, 8], strides = [1, 1]} : vector<8x32xf32> to vector<8x8xf32>
    %cst_25 = arith.constant dense<0.000000e+00> : vector<8x8xf32>
    %65 = tpu.matmul %63, %64, %cst_25 {dimension_numbers = #tpu.dot_dimension_numbers<[1], [1], [0], [0], [0, 0, 1, 0], [], []>} : vector<8x8xf32>, vector<8x8xf32>, vector<8x8xf32> -> vector<8x8xf32>
    %cst_26 = arith.constant 0.353553385 : f32
    %66 = vector.broadcast %cst_26 : f32 to vector<8x8xf32>
    %67 = arith.mulf %65, %66 : vector<8x8xf32>
    %68 = vector.broadcast %43 : vector<1x8xf32> to vector<8x8xf32>
    %69 = arith.addf %67, %68 : vector<8x8xf32>
    %cst_27 = arith.constant dense<0xFF800000> : vector<8xf32>
    %70 = vector.multi_reduction <maximumf>, %69, %cst_27 [1] : vector<8x8xf32> to vector<8xf32>
    %71 = vector.shape_cast %70 : vector<8xf32> to vector<8x1xf32>
    %72 = vector.broadcast %71 : vector<8x1xf32> to vector<8x8xf32>
    %73 = arith.subf %69, %72 : vector<8x8xf32>
    %74 = math.exp %73 : vector<8x8xf32>
    %cst_28 = arith.constant dense<0.000000e+00> : vector<8xf32>
    %75 = vector.multi_reduction <add>, %74, %cst_28 [1] : vector<8x8xf32> to vector<8xf32>
    %76 = vector.shape_cast %75 : vector<8xf32> to vector<8x1xf32>
    %77 = tpu.reciprocal %76 {approx = true} : vector<8x1xf32> -> vector<8x1xf32>
    %78 = vector.broadcast %77 : vector<8x1xf32> to vector<8x8xf32>
    %79 = arith.mulf %74, %78 : vector<8x8xf32>
    %80 = vector.extract_strided_slice %42 {offsets = [0, 8], sizes = [8, 8], strides = [1, 1]} : vector<8x32xf32> to vector<8x8xf32>
    %cst_29 = arith.constant dense<0.000000e+00> : vector<8x8xf32>
    %81 = tpu.matmul %79, %80, %cst_29 {dimension_numbers = #tpu.dot_dimension_numbers<[1], [0], [0], [1], [0, 0, 1, 1], [], []>} : vector<8x8xf32>, vector<8x8xf32>, vector<8x8xf32> -> vector<8x8xf32>
    %82 = vector.extract_strided_slice %40 {offsets = [0, 16], sizes = [8, 8], strides = [1, 1]} : vector<8x32xf32> to vector<8x8xf32>
    %83 = vector.extract_strided_slice %41 {offsets = [0, 16], sizes = [8, 8], strides = [1, 1]} : vector<8x32xf32> to vector<8x8xf32>
    %cst_30 = arith.constant dense<0.000000e+00> : vector<8x8xf32>
    %84 = tpu.matmul %82, %83, %cst_30 {dimension_numbers = #tpu.dot_dimension_numbers<[1], [1], [0], [0], [0, 0, 1, 0], [], []>} : vector<8x8xf32>, vector<8x8xf32>, vector<8x8xf32> -> vector<8x8xf32>
    %cst_31 = arith.constant 0.353553385 : f32
    %85 = vector.broadcast %cst_31 : f32 to vector<8x8xf32>
    %86 = arith.mulf %84, %85 : vector<8x8xf32>
    %87 = vector.broadcast %43 : vector<1x8xf32> to vector<8x8xf32>
    %88 = arith.addf %86, %87 : vector<8x8xf32>
    %cst_32 = arith.constant dense<0xFF800000> : vector<8xf32>
    %89 = vector.multi_reduction <maximumf>, %88, %cst_32 [1] : vector<8x8xf32> to vector<8xf32>
    %90 = vector.shape_cast %89 : vector<8xf32> to vector<8x1xf32>
    %91 = vector.broadcast %90 : vector<8x1xf32> to vector<8x8xf32>
    %92 = arith.subf %88, %91 : vector<8x8xf32>
    %93 = math.exp %92 : vector<8x8xf32>
    %cst_33 = arith.constant dense<0.000000e+00> : vector<8xf32>
    %94 = vector.multi_reduction <add>, %93, %cst_33 [1] : vector<8x8xf32> to vector<8xf32>
    %95 = vector.shape_cast %94 : vector<8xf32> to vector<8x1xf32>
    %96 = tpu.reciprocal %95 {approx = true} : vector<8x1xf32> -> vector<8x1xf32>
    %97 = vector.broadcast %96 : vector<8x1xf32> to vector<8x8xf32>
    %98 = arith.mulf %93, %97 : vector<8x8xf32>
    %99 = vector.extract_strided_slice %42 {offsets = [0, 16], sizes = [8, 8], strides = [1, 1]} : vector<8x32xf32> to vector<8x8xf32>
    %cst_34 = arith.constant dense<0.000000e+00> : vector<8x8xf32>
    %100 = tpu.matmul %98, %99, %cst_34 {dimension_numbers = #tpu.dot_dimension_numbers<[1], [0], [0], [1], [0, 0, 1, 1], [], []>} : vector<8x8xf32>, vector<8x8xf32>, vector<8x8xf32> -> vector<8x8xf32>
    %101 = vector.extract_strided_slice %40 {offsets = [0, 24], sizes = [8, 8], strides = [1, 1]} : vector<8x32xf32> to vector<8x8xf32>
    %102 = vector.extract_strided_slice %41 {offsets = [0, 24], sizes = [8, 8], strides = [1, 1]} : vector<8x32xf32> to vector<8x8xf32>
    %cst_35 = arith.constant dense<0.000000e+00> : vector<8x8xf32>
    %103 = tpu.matmul %101, %102, %cst_35 {dimension_numbers = #tpu.dot_dimension_numbers<[1], [1], [0], [0], [0, 0, 1, 0], [], []>} : vector<8x8xf32>, vector<8x8xf32>, vector<8x8xf32> -> vector<8x8xf32>
    %cst_36 = arith.constant 0.353553385 : f32
    %104 = vector.broadcast %cst_36 : f32 to vector<8x8xf32>
    %105 = arith.mulf %103, %104 : vector<8x8xf32>
    %106 = vector.broadcast %43 : vector<1x8xf32> to vector<8x8xf32>
    %107 = arith.addf %105, %106 : vector<8x8xf32>
    %cst_37 = arith.constant dense<0xFF800000> : vector<8xf32>
    %108 = vector.multi_reduction <maximumf>, %107, %cst_37 [1] : vector<8x8xf32> to vector<8xf32>
    %109 = vector.shape_cast %108 : vector<8xf32> to vector<8x1xf32>
    %110 = vector.broadcast %109 : vector<8x1xf32> to vector<8x8xf32>
    %111 = arith.subf %107, %110 : vector<8x8xf32>
    %112 = math.exp %111 : vector<8x8xf32>
    %cst_38 = arith.constant dense<0.000000e+00> : vector<8xf32>
    %113 = vector.multi_reduction <add>, %112, %cst_38 [1] : vector<8x8xf32> to vector<8xf32>
    %114 = vector.shape_cast %113 : vector<8xf32> to vector<8x1xf32>
    %115 = tpu.reciprocal %114 {approx = true} : vector<8x1xf32> -> vector<8x1xf32>
    %116 = vector.broadcast %115 : vector<8x1xf32> to vector<8x8xf32>
    %117 = arith.mulf %112, %116 : vector<8x8xf32>
    %118 = vector.extract_strided_slice %42 {offsets = [0, 24], sizes = [8, 8], strides = [1, 1]} : vector<8x32xf32> to vector<8x8xf32>
    %cst_39 = arith.constant dense<0.000000e+00> : vector<8x8xf32>
    %119 = tpu.matmul %117, %118, %cst_39 {dimension_numbers = #tpu.dot_dimension_numbers<[1], [0], [0], [1], [0, 0, 1, 1], [], []>} : vector<8x8xf32>, vector<8x8xf32>, vector<8x8xf32> -> vector<8x8xf32>
    %120 = tpu.concatenate %62, %81, %100, %119 in 1 : vector<8x8xf32>, vector<8x8xf32>, vector<8x8xf32>, vector<8x8xf32> -> vector<8x32xf32>
    %121 = vector.extract_strided_slice %37 {offsets = [8, 0], sizes = [8, 32], strides = [1, 1]} : vector<16x32xf32> to vector<8x32xf32>
    %122 = vector.extract_strided_slice %38 {offsets = [8, 0], sizes = [8, 32], strides = [1, 1]} : vector<16x32xf32> to vector<8x32xf32>
    %123 = vector.extract_strided_slice %39 {offsets = [8, 0], sizes = [8, 32], strides = [1, 1]} : vector<16x32xf32> to vector<8x32xf32>
    %124 = vector.extract_strided_slice %4 {offsets = [1, 0], sizes = [1, 8], strides = [1, 1]} : vector<2x8xf32> to vector<1x8xf32>
    %125 = vector.extract_strided_slice %121 {offsets = [0, 0], sizes = [8, 8], strides = [1, 1]} : vector<8x32xf32> to vector<8x8xf32>
    %126 = vector.extract_strided_slice %122 {offsets = [0, 0], sizes = [8, 8], strides = [1, 1]} : vector<8x32xf32> to vector<8x8xf32>
    %cst_40 = arith.constant dense<0.000000e+00> : vector<8x8xf32>
    %127 = tpu.matmul %125, %126, %cst_40 {dimension_numbers = #tpu.dot_dimension_numbers<[1], [1], [0], [0], [0, 0, 1, 0], [], []>} : vector<8x8xf32>, vector<8x8xf32>, vector<8x8xf32> -> vector<8x8xf32>
    %cst_41 = arith.constant 0.353553385 : f32
    %128 = vector.broadcast %cst_41 : f32 to vector<8x8xf32>
    %129 = arith.mulf %127, %128 : vector<8x8xf32>
    %130 = vector.broadcast %124 : vector<1x8xf32> to vector<8x8xf32>
    %131 = arith.addf %129, %130 : vector<8x8xf32>
    %cst_42 = arith.constant dense<0xFF800000> : vector<8xf32>
    %132 = vector.multi_reduction <maximumf>, %131, %cst_42 [1] : vector<8x8xf32> to vector<8xf32>
    %133 = vector.shape_cast %132 : vector<8xf32> to vector<8x1xf32>
    %134 = vector.broadcast %133 : vector<8x1xf32> to vector<8x8xf32>
    %135 = arith.subf %131, %134 : vector<8x8xf32>
    %136 = math.exp %135 : vector<8x8xf32>
    %cst_43 = arith.constant dense<0.000000e+00> : vector<8xf32>
    %137 = vector.multi_reduction <add>, %136, %cst_43 [1] : vector<8x8xf32> to vector<8xf32>
    %138 = vector.shape_cast %137 : vector<8xf32> to vector<8x1xf32>
    %139 = tpu.reciprocal %138 {approx = true} : vector<8x1xf32> -> vector<8x1xf32>
    %140 = vector.broadcast %139 : vector<8x1xf32> to vector<8x8xf32>
    %141 = arith.mulf %136, %140 : vector<8x8xf32>
    %142 = vector.extract_strided_slice %123 {offsets = [0, 0], sizes = [8, 8], strides = [1, 1]} : vector<8x32xf32> to vector<8x8xf32>
    %cst_44 = arith.constant dense<0.000000e+00> : vector<8x8xf32>
    %143 = tpu.matmul %141, %142, %cst_44 {dimension_numbers = #tpu.dot_dimension_numbers<[1], [0], [0], [1], [0, 0, 1, 1], [], []>} : vector<8x8xf32>, vector<8x8xf32>, vector<8x8xf32> -> vector<8x8xf32>
    %144 = vector.extract_strided_slice %121 {offsets = [0, 8], sizes = [8, 8], strides = [1, 1]} : vector<8x32xf32> to vector<8x8xf32>
    %145 = vector.extract_strided_slice %122 {offsets = [0, 8], sizes = [8, 8], strides = [1, 1]} : vector<8x32xf32> to vector<8x8xf32>
    %cst_45 = arith.constant dense<0.000000e+00> : vector<8x8xf32>
    %146 = tpu.matmul %144, %145, %cst_45 {dimension_numbers = #tpu.dot_dimension_numbers<[1], [1], [0], [0], [0, 0, 1, 0], [], []>} : vector<8x8xf32>, vector<8x8xf32>, vector<8x8xf32> -> vector<8x8xf32>
    %cst_46 = arith.constant 0.353553385 : f32
    %147 = vector.broadcast %cst_46 : f32 to vector<8x8xf32>
    %148 = arith.mulf %146, %147 : vector<8x8xf32>
    %149 = vector.broadcast %124 : vector<1x8xf32> to vector<8x8xf32>
    %150 = arith.addf %148, %149 : vector<8x8xf32>
    %cst_47 = arith.constant dense<0xFF800000> : vector<8xf32>
    %151 = vector.multi_reduction <maximumf>, %150, %cst_47 [1] : vector<8x8xf32> to vector<8xf32>
    %152 = vector.shape_cast %151 : vector<8xf32> to vector<8x1xf32>
    %153 = vector.broadcast %152 : vector<8x1xf32> to vector<8x8xf32>
    %154 = arith.subf %150, %153 : vector<8x8xf32>
    %155 = math.exp %154 : vector<8x8xf32>
    %cst_48 = arith.constant dense<0.000000e+00> : vector<8xf32>
    %156 = vector.multi_reduction <add>, %155, %cst_48 [1] : vector<8x8xf32> to vector<8xf32>
    %157 = vector.shape_cast %156 : vector<8xf32> to vector<8x1xf32>
    %158 = tpu.reciprocal %157 {approx = true} : vector<8x1xf32> -> vector<8x1xf32>
    %159 = vector.broadcast %158 : vector<8x1xf32> to vector<8x8xf32>
    %160 = arith.mulf %155, %159 : vector<8x8xf32>
    %161 = vector.extract_strided_slice %123 {offsets = [0, 8], sizes = [8, 8], strides = [1, 1]} : vector<8x32xf32> to vector<8x8xf32>
    %cst_49 = arith.constant dense<0.000000e+00> : vector<8x8xf32>
    %162 = tpu.matmul %160, %161, %cst_49 {dimension_numbers = #tpu.dot_dimension_numbers<[1], [0], [0], [1], [0, 0, 1, 1], [], []>} : vector<8x8xf32>, vector<8x8xf32>, vector<8x8xf32> -> vector<8x8xf32>
    %163 = vector.extract_strided_slice %121 {offsets = [0, 16], sizes = [8, 8], strides = [1, 1]} : vector<8x32xf32> to vector<8x8xf32>
    %164 = vector.extract_strided_slice %122 {offsets = [0, 16], sizes = [8, 8], strides = [1, 1]} : vector<8x32xf32> to vector<8x8xf32>
    %cst_50 = arith.constant dense<0.000000e+00> : vector<8x8xf32>
    %165 = tpu.matmul %163, %164, %cst_50 {dimension_numbers = #tpu.dot_dimension_numbers<[1], [1], [0], [0], [0, 0, 1, 0], [], []>} : vector<8x8xf32>, vector<8x8xf32>, vector<8x8xf32> -> vector<8x8xf32>
    %cst_51 = arith.constant 0.353553385 : f32
    %166 = vector.broadcast %cst_51 : f32 to vector<8x8xf32>
    %167 = arith.mulf %165, %166 : vector<8x8xf32>
    %168 = vector.broadcast %124 : vector<1x8xf32> to vector<8x8xf32>
    %169 = arith.addf %167, %168 : vector<8x8xf32>
    %cst_52 = arith.constant dense<0xFF800000> : vector<8xf32>
    %170 = vector.multi_reduction <maximumf>, %169, %cst_52 [1] : vector<8x8xf32> to vector<8xf32>
    %171 = vector.shape_cast %170 : vector<8xf32> to vector<8x1xf32>
    %172 = vector.broadcast %171 : vector<8x1xf32> to vector<8x8xf32>
    %173 = arith.subf %169, %172 : vector<8x8xf32>
    %174 = math.exp %173 : vector<8x8xf32>
    %cst_53 = arith.constant dense<0.000000e+00> : vector<8xf32>
    %175 = vector.multi_reduction <add>, %174, %cst_53 [1] : vector<8x8xf32> to vector<8xf32>
    %176 = vector.shape_cast %175 : vector<8xf32> to vector<8x1xf32>
    %177 = tpu.reciprocal %176 {approx = true} : vector<8x1xf32> -> vector<8x1xf32>
    %178 = vector.broadcast %177 : vector<8x1xf32> to vector<8x8xf32>
    %179 = arith.mulf %174, %178 : vector<8x8xf32>
    %180 = vector.extract_strided_slice %123 {offsets = [0, 16], sizes = [8, 8], strides = [1, 1]} : vector<8x32xf32> to vector<8x8xf32>
    %cst_54 = arith.constant dense<0.000000e+00> : vector<8x8xf32>
    %181 = tpu.matmul %179, %180, %cst_54 {dimension_numbers = #tpu.dot_dimension_numbers<[1], [0], [0], [1], [0, 0, 1, 1], [], []>} : vector<8x8xf32>, vector<8x8xf32>, vector<8x8xf32> -> vector<8x8xf32>
    %182 = vector.extract_strided_slice %121 {offsets = [0, 24], sizes = [8, 8], strides = [1, 1]} : vector<8x32xf32> to vector<8x8xf32>
    %183 = vector.extract_strided_slice %122 {offsets = [0, 24], sizes = [8, 8], strides = [1, 1]} : vector<8x32xf32> to vector<8x8xf32>
    %cst_55 = arith.constant dense<0.000000e+00> : vector<8x8xf32>
    %184 = tpu.matmul %182, %183, %cst_55 {dimension_numbers = #tpu.dot_dimension_numbers<[1], [1], [0], [0], [0, 0, 1, 0], [], []>} : vector<8x8xf32>, vector<8x8xf32>, vector<8x8xf32> -> vector<8x8xf32>
    %cst_56 = arith.constant 0.353553385 : f32
    %185 = vector.broadcast %cst_56 : f32 to vector<8x8xf32>
    %186 = arith.mulf %184, %185 : vector<8x8xf32>
    %187 = vector.broadcast %124 : vector<1x8xf32> to vector<8x8xf32>
    %188 = arith.addf %186, %187 : vector<8x8xf32>
    %cst_57 = arith.constant dense<0xFF800000> : vector<8xf32>
    %189 = vector.multi_reduction <maximumf>, %188, %cst_57 [1] : vector<8x8xf32> to vector<8xf32>
    %190 = vector.shape_cast %189 : vector<8xf32> to vector<8x1xf32>
    %191 = vector.broadcast %190 : vector<8x1xf32> to vector<8x8xf32>
    %192 = arith.subf %188, %191 : vector<8x8xf32>
    %193 = math.exp %192 : vector<8x8xf32>
    %cst_58 = arith.constant dense<0.000000e+00> : vector<8xf32>
    %194 = vector.multi_reduction <add>, %193, %cst_58 [1] : vector<8x8xf32> to vector<8xf32>
    %195 = vector.shape_cast %194 : vector<8xf32> to vector<8x1xf32>
    %196 = tpu.reciprocal %195 {approx = true} : vector<8x1xf32> -> vector<8x1xf32>
    %197 = vector.broadcast %196 : vector<8x1xf32> to vector<8x8xf32>
    %198 = arith.mulf %193, %197 : vector<8x8xf32>
    %199 = vector.extract_strided_slice %123 {offsets = [0, 24], sizes = [8, 8], strides = [1, 1]} : vector<8x32xf32> to vector<8x8xf32>
    %cst_59 = arith.constant dense<0.000000e+00> : vector<8x8xf32>
    %200 = tpu.matmul %198, %199, %cst_59 {dimension_numbers = #tpu.dot_dimension_numbers<[1], [0], [0], [1], [0, 0, 1, 1], [], []>} : vector<8x8xf32>, vector<8x8xf32>, vector<8x8xf32> -> vector<8x8xf32>
    %201 = tpu.concatenate %143, %162, %181, %200 in 1 : vector<8x8xf32>, vector<8x8xf32>, vector<8x8xf32>, vector<8x8xf32> -> vector<8x32xf32>
    %202 = tpu.concatenate %120, %201 in 0 : vector<8x32xf32>, vector<8x32xf32> -> vector<16x32xf32>
    %c0_60 = arith.constant 0 : index
    %c0_61 = arith.constant 0 : index
    %c0_62 = arith.constant 0 : index
    %203 = vector.load %arg6[%c0_60, %c0_61, %c0_62] : memref<2x32x32xf32, #tpu.memory_space<vmem>>, vector<1x32x32xf32>
    %204 = vector.shape_cast %203 : vector<1x32x32xf32> to vector<32x32xf32>
    %cst_63 = arith.constant dense<0.000000e+00> : vector<16x32xf32>
    %205 = tpu.matmul %202, %204, %cst_63 {dimension_numbers = #tpu.dot_dimension_numbers<[1], [0], [0], [1], [0, 0, 1, 1], [], []>} : vector<16x32xf32>, vector<32x32xf32>, vector<16x32xf32> -> vector<16x32xf32>
    %c0_64 = arith.constant 0 : index
    %c0_65 = arith.constant 0 : index
    %c0_66 = arith.constant 0 : index
    %206 = vector.load %arg7[%c0_64, %c0_65, %c0_66] : memref<2x1x32xf32, #tpu.memory_space<vmem>>, vector<1x1x32xf32>
    %207 = vector.shape_cast %206 : vector<1x1x32xf32> to vector<1x32xf32>
    %208 = vector.broadcast %207 : vector<1x32xf32> to vector<16x32xf32>
    %209 = arith.addf %205, %208 : vector<16x32xf32>
    %210 = arith.addf %209, %29 : vector<16x32xf32>
    %c0_67 = arith.constant 0 : index
    %c0_68 = arith.constant 0 : index
    %c0_69 = arith.constant 0 : index
    %211 = vector.load %arg8[%c0_67, %c0_68, %c0_69] : memref<2x1x32xf32, #tpu.memory_space<vmem>>, vector<1x1x32xf32>
    %212 = vector.shape_cast %211 : vector<1x1x32xf32> to vector<1x32xf32>
    %c0_70 = arith.constant 0 : index
    %c0_71 = arith.constant 0 : index
    %c0_72 = arith.constant 0 : index
    %213 = vector.load %arg9[%c0_70, %c0_71, %c0_72] : memref<2x1x32xf32, #tpu.memory_space<vmem>>, vector<1x1x32xf32>
    %214 = vector.shape_cast %213 : vector<1x1x32xf32> to vector<1x32xf32>
    %cst_73 = arith.constant dense<0.000000e+00> : vector<16xf32>
    %215 = vector.multi_reduction <add>, %210, %cst_73 [1] : vector<16x32xf32> to vector<16xf32>
    %216 = vector.shape_cast %215 : vector<16xf32> to vector<16x1xf32>
    %cst_74 = arith.constant 3.200000e+01 : f32
    %217 = vector.broadcast %cst_74 : f32 to vector<16x1xf32>
    %218 = arith.divf %216, %217 : vector<16x1xf32>
    %219 = vector.broadcast %218 : vector<16x1xf32> to vector<16x32xf32>
    %220 = arith.subf %210, %219 : vector<16x32xf32>
    %221 = arith.mulf %220, %220 : vector<16x32xf32>
    %cst_75 = arith.constant dense<0.000000e+00> : vector<16xf32>
    %222 = vector.multi_reduction <add>, %221, %cst_75 [1] : vector<16x32xf32> to vector<16xf32>
    %223 = vector.shape_cast %222 : vector<16xf32> to vector<16x1xf32>
    %cst_76 = arith.constant 3.200000e+01 : f32
    %224 = vector.broadcast %cst_76 : f32 to vector<16x1xf32>
    %225 = arith.divf %223, %224 : vector<16x1xf32>
    %226 = vector.broadcast %218 : vector<16x1xf32> to vector<16x32xf32>
    %227 = arith.subf %210, %226 : vector<16x32xf32>
    %cst_77 = arith.constant 9.99999996E-13 : f32
    %228 = vector.broadcast %cst_77 : f32 to vector<16x1xf32>
    %229 = arith.addf %225, %228 : vector<16x1xf32>
    %230 = math.rsqrt %229 : vector<16x1xf32>
    %231 = vector.broadcast %230 : vector<16x1xf32> to vector<16x32xf32>
    %232 = arith.mulf %227, %231 : vector<16x32xf32>
    %233 = vector.broadcast %212 : vector<1x32xf32> to vector<16x32xf32>
    %234 = arith.mulf %232, %233 : vector<16x32xf32>
    %235 = vector.broadcast %214 : vector<1x32xf32> to vector<16x32xf32>
    %236 = arith.addf %234, %235 : vector<16x32xf32>
    %c0_78 = arith.constant 0 : index
    %c0_79 = arith.constant 0 : index
    %c0_80 = arith.constant 0 : index
    %237 = vector.load %arg10[%c0_78, %c0_79, %c0_80] : memref<2x32x64xf32, #tpu.memory_space<vmem>>, vector<1x32x64xf32>
    %238 = vector.shape_cast %237 : vector<1x32x64xf32> to vector<32x64xf32>
    %cst_81 = arith.constant dense<0.000000e+00> : vector<16x64xf32>
    %239 = tpu.matmul %236, %238, %cst_81 {dimension_numbers = #tpu.dot_dimension_numbers<[1], [0], [0], [1], [0, 0, 1, 1], [], []>} : vector<16x32xf32>, vector<32x64xf32>, vector<16x64xf32> -> vector<16x64xf32>
    %c0_82 = arith.constant 0 : index
    %c0_83 = arith.constant 0 : index
    %c0_84 = arith.constant 0 : index
    %240 = vector.load %arg11[%c0_82, %c0_83, %c0_84] : memref<2x1x64xf32, #tpu.memory_space<vmem>>, vector<1x1x64xf32>
    %241 = vector.shape_cast %240 : vector<1x1x64xf32> to vector<1x64xf32>
    %242 = vector.broadcast %241 : vector<1x64xf32> to vector<16x64xf32>
    %243 = arith.addf %239, %242 : vector<16x64xf32>
    %cst_85 = arith.constant 5.000000e-01 : f32
    %244 = vector.broadcast %cst_85 : f32 to vector<16x64xf32>
    %245 = arith.mulf %244, %243 : vector<16x64xf32>
    %cst_86 = arith.constant 4.471500e-02 : f32
    %246 = vector.broadcast %cst_86 : f32 to vector<16x64xf32>
    %247 = arith.mulf %246, %243 : vector<16x64xf32>
    %248 = arith.mulf %247, %243 : vector<16x64xf32>
    %249 = arith.mulf %248, %243 : vector<16x64xf32>
    %250 = arith.addf %243, %249 : vector<16x64xf32>
    %cst_87 = arith.constant 0.797884583 : f32
    %251 = vector.broadcast %cst_87 : f32 to vector<16x64xf32>
    %252 = arith.mulf %251, %250 : vector<16x64xf32>
    %253 = math.tanh %252 : vector<16x64xf32>
    %cst_88 = arith.constant 1.000000e+00 : f32
    %254 = vector.broadcast %cst_88 : f32 to vector<16x64xf32>
    %255 = arith.addf %254, %253 : vector<16x64xf32>
    %256 = arith.mulf %245, %255 : vector<16x64xf32>
    %c0_89 = arith.constant 0 : index
    %c0_90 = arith.constant 0 : index
    %c0_91 = arith.constant 0 : index
    %257 = vector.load %arg12[%c0_89, %c0_90, %c0_91] : memref<2x64x32xf32, #tpu.memory_space<vmem>>, vector<1x64x32xf32>
    %258 = vector.shape_cast %257 : vector<1x64x32xf32> to vector<64x32xf32>
    %cst_92 = arith.constant dense<0.000000e+00> : vector<16x32xf32>
    %259 = tpu.matmul %256, %258, %cst_92 {dimension_numbers = #tpu.dot_dimension_numbers<[1], [0], [0], [1], [0, 0, 1, 1], [], []>} : vector<16x64xf32>, vector<64x32xf32>, vector<16x32xf32> -> vector<16x32xf32>
    %c0_93 = arith.constant 0 : index
    %c0_94 = arith.constant 0 : index
    %c0_95 = arith.constant 0 : index
    %260 = vector.load %arg13[%c0_93, %c0_94, %c0_95] : memref<2x1x32xf32, #tpu.memory_space<vmem>>, vector<1x1x32xf32>
    %261 = vector.shape_cast %260 : vector<1x1x32xf32> to vector<1x32xf32>
    %262 = vector.broadcast %261 : vector<1x32xf32> to vector<16x32xf32>
    %263 = arith.addf %259, %262 : vector<16x32xf32>
    %264 = arith.addf %263, %236 : vector<16x32xf32>
    %c0_96 = arith.constant 0 : index
    %c0_97 = arith.constant 0 : index
    %c0_98 = arith.constant 0 : index
    %265 = vector.load %arg14[%c0_96, %c0_97, %c0_98] : memref<2x1x32xf32, #tpu.memory_space<vmem>>, vector<1x1x32xf32>
    %266 = vector.shape_cast %265 : vector<1x1x32xf32> to vector<1x32xf32>
    %c0_99 = arith.constant 0 : index
    %c0_100 = arith.constant 0 : index
    %c0_101 = arith.constant 0 : index
    %267 = vector.load %arg15[%c0_99, %c0_100, %c0_101] : memref<2x1x32xf32, #tpu.memory_space<vmem>>, vector<1x1x32xf32>
    %268 = vector.shape_cast %267 : vector<1x1x32xf32> to vector<1x32xf32>
    %cst_102 = arith.constant dense<0.000000e+00> : vector<16xf32>
    %269 = vector.multi_reduction <add>, %264, %cst_102 [1] : vector<16x32xf32> to vector<16xf32>
    %270 = vector.shape_cast %269 : vector<16xf32> to vector<16x1xf32>
    %cst_103 = arith.constant 3.200000e+01 : f32
    %271 = vector.broadcast %cst_103 : f32 to vector<16x1xf32>
    %272 = arith.divf %270, %271 : vector<16x1xf32>
    %273 = vector.broadcast %272 : vector<16x1xf32> to vector<16x32xf32>
    %274 = arith.subf %264, %273 : vector<16x32xf32>
    %275 = arith.mulf %274, %274 : vector<16x32xf32>
    %cst_104 = arith.constant dense<0.000000e+00> : vector<16xf32>
    %276 = vector.multi_reduction <add>, %275, %cst_104 [1] : vector<16x32xf32> to vector<16xf32>
    %277 = vector.shape_cast %276 : vector<16xf32> to vector<16x1xf32>
    %cst_105 = arith.constant 3.200000e+01 : f32
    %278 = vector.broadcast %cst_105 : f32 to vector<16x1xf32>
    %279 = arith.divf %277, %278 : vector<16x1xf32>
    %280 = vector.broadcast %272 : vector<16x1xf32> to vector<16x32xf32>
    %281 = arith.subf %264, %280 : vector<16x32xf32>
    %cst_106 = arith.constant 9.99999996E-13 : f32
    %282 = vector.broadcast %cst_106 : f32 to vector<16x1xf32>
    %283 = arith.addf %279, %282 : vector<16x1xf32>
    %284 = math.rsqrt %283 : vector<16x1xf32>
    %285 = vector.broadcast %284 : vector<16x1xf32> to vector<16x32xf32>
    %286 = arith.mulf %281, %285 : vector<16x32xf32>
    %287 = vector.broadcast %266 : vector<1x32xf32> to vector<16x32xf32>
    %288 = arith.mulf %286, %287 : vector<16x32xf32>
    %289 = vector.broadcast %268 : vector<1x32xf32> to vector<16x32xf32>
    %290 = arith.addf %288, %289 : vector<16x32xf32>
    %c1 = arith.constant 1 : index
    %c0_107 = arith.constant 0 : index
    %c0_108 = arith.constant 0 : index
    %291 = vector.load %arg4[%c1, %c0_107, %c0_108] : memref<2x32x96xf32, #tpu.memory_space<vmem>>, vector<1x32x96xf32>
    %292 = vector.shape_cast %291 : vector<1x32x96xf32> to vector<32x96xf32>
    %cst_109 = arith.constant dense<0.000000e+00> : vector<16x96xf32>
    %293 = tpu.matmul %290, %292, %cst_109 {dimension_numbers = #tpu.dot_dimension_numbers<[1], [0], [0], [1], [0, 0, 1, 1], [], []>} : vector<16x32xf32>, vector<32x96xf32>, vector<16x96xf32> -> vector<16x96xf32>
    %c1_110 = arith.constant 1 : index
    %c0_111 = arith.constant 0 : index
    %c0_112 = arith.constant 0 : index
    %294 = vector.load %arg5[%c1_110, %c0_111, %c0_112] : memref<2x1x96xf32, #tpu.memory_space<vmem>>, vector<1x1x96xf32>
    %295 = vector.shape_cast %294 : vector<1x1x96xf32> to vector<1x96xf32>
    %296 = vector.broadcast %295 : vector<1x96xf32> to vector<16x96xf32>
    %297 = arith.addf %293, %296 : vector<16x96xf32>
    %298 = vector.extract_strided_slice %297 {offsets = [0, 0], sizes = [16, 32], strides = [1, 1]} : vector<16x96xf32> to vector<16x32xf32>
    %299 = vector.extract_strided_slice %297 {offsets = [0, 32], sizes = [16, 32], strides = [1, 1]} : vector<16x96xf32> to vector<16x32xf32>
    %300 = vector.extract_strided_slice %297 {offsets = [0, 64], sizes = [16, 32], strides = [1, 1]} : vector<16x96xf32> to vector<16x32xf32>
    %301 = vector.extract_strided_slice %298 {offsets = [0, 0], sizes = [8, 32], strides = [1, 1]} : vector<16x32xf32> to vector<8x32xf32>
    %302 = vector.extract_strided_slice %299 {offsets = [0, 0], sizes = [8, 32], strides = [1, 1]} : vector<16x32xf32> to vector<8x32xf32>
    %303 = vector.extract_strided_slice %300 {offsets = [0, 0], sizes = [8, 32], strides = [1, 1]} : vector<16x32xf32> to vector<8x32xf32>
    %304 = vector.extract_strided_slice %4 {offsets = [0, 0], sizes = [1, 8], strides = [1, 1]} : vector<2x8xf32> to vector<1x8xf32>
    %305 = vector.extract_strided_slice %301 {offsets = [0, 0], sizes = [8, 8], strides = [1, 1]} : vector<8x32xf32> to vector<8x8xf32>
    %306 = vector.extract_strided_slice %302 {offsets = [0, 0], sizes = [8, 8], strides = [1, 1]} : vector<8x32xf32> to vector<8x8xf32>
    %cst_113 = arith.constant dense<0.000000e+00> : vector<8x8xf32>
    %307 = tpu.matmul %305, %306, %cst_113 {dimension_numbers = #tpu.dot_dimension_numbers<[1], [1], [0], [0], [0, 0, 1, 0], [], []>} : vector<8x8xf32>, vector<8x8xf32>, vector<8x8xf32> -> vector<8x8xf32>
    %cst_114 = arith.constant 0.353553385 : f32
    %308 = vector.broadcast %cst_114 : f32 to vector<8x8xf32>
    %309 = arith.mulf %307, %308 : vector<8x8xf32>
    %310 = vector.broadcast %304 : vector<1x8xf32> to vector<8x8xf32>
    %311 = arith.addf %309, %310 : vector<8x8xf32>
    %cst_115 = arith.constant dense<0xFF800000> : vector<8xf32>
    %312 = vector.multi_reduction <maximumf>, %311, %cst_115 [1] : vector<8x8xf32> to vector<8xf32>
    %313 = vector.shape_cast %312 : vector<8xf32> to vector<8x1xf32>
    %314 = vector.broadcast %313 : vector<8x1xf32> to vector<8x8xf32>
    %315 = arith.subf %311, %314 : vector<8x8xf32>
    %316 = math.exp %315 : vector<8x8xf32>
    %cst_116 = arith.constant dense<0.000000e+00> : vector<8xf32>
    %317 = vector.multi_reduction <add>, %316, %cst_116 [1] : vector<8x8xf32> to vector<8xf32>
    %318 = vector.shape_cast %317 : vector<8xf32> to vector<8x1xf32>
    %319 = tpu.reciprocal %318 {approx = true} : vector<8x1xf32> -> vector<8x1xf32>
    %320 = vector.broadcast %319 : vector<8x1xf32> to vector<8x8xf32>
    %321 = arith.mulf %316, %320 : vector<8x8xf32>
    %322 = vector.extract_strided_slice %303 {offsets = [0, 0], sizes = [8, 8], strides = [1, 1]} : vector<8x32xf32> to vector<8x8xf32>
    %cst_117 = arith.constant dense<0.000000e+00> : vector<8x8xf32>
    %323 = tpu.matmul %321, %322, %cst_117 {dimension_numbers = #tpu.dot_dimension_numbers<[1], [0], [0], [1], [0, 0, 1, 1], [], []>} : vector<8x8xf32>, vector<8x8xf32>, vector<8x8xf32> -> vector<8x8xf32>
    %324 = vector.extract_strided_slice %301 {offsets = [0, 8], sizes = [8, 8], strides = [1, 1]} : vector<8x32xf32> to vector<8x8xf32>
    %325 = vector.extract_strided_slice %302 {offsets = [0, 8], sizes = [8, 8], strides = [1, 1]} : vector<8x32xf32> to vector<8x8xf32>
    %cst_118 = arith.constant dense<0.000000e+00> : vector<8x8xf32>
    %326 = tpu.matmul %324, %325, %cst_118 {dimension_numbers = #tpu.dot_dimension_numbers<[1], [1], [0], [0], [0, 0, 1, 0], [], []>} : vector<8x8xf32>, vector<8x8xf32>, vector<8x8xf32> -> vector<8x8xf32>
    %cst_119 = arith.constant 0.353553385 : f32
    %327 = vector.broadcast %cst_119 : f32 to vector<8x8xf32>
    %328 = arith.mulf %326, %327 : vector<8x8xf32>
    %329 = vector.broadcast %304 : vector<1x8xf32> to vector<8x8xf32>
    %330 = arith.addf %328, %329 : vector<8x8xf32>
    %cst_120 = arith.constant dense<0xFF800000> : vector<8xf32>
    %331 = vector.multi_reduction <maximumf>, %330, %cst_120 [1] : vector<8x8xf32> to vector<8xf32>
    %332 = vector.shape_cast %331 : vector<8xf32> to vector<8x1xf32>
    %333 = vector.broadcast %332 : vector<8x1xf32> to vector<8x8xf32>
    %334 = arith.subf %330, %333 : vector<8x8xf32>
    %335 = math.exp %334 : vector<8x8xf32>
    %cst_121 = arith.constant dense<0.000000e+00> : vector<8xf32>
    %336 = vector.multi_reduction <add>, %335, %cst_121 [1] : vector<8x8xf32> to vector<8xf32>
    %337 = vector.shape_cast %336 : vector<8xf32> to vector<8x1xf32>
    %338 = tpu.reciprocal %337 {approx = true} : vector<8x1xf32> -> vector<8x1xf32>
    %339 = vector.broadcast %338 : vector<8x1xf32> to vector<8x8xf32>
    %340 = arith.mulf %335, %339 : vector<8x8xf32>
    %341 = vector.extract_strided_slice %303 {offsets = [0, 8], sizes = [8, 8], strides = [1, 1]} : vector<8x32xf32> to vector<8x8xf32>
    %cst_122 = arith.constant dense<0.000000e+00> : vector<8x8xf32>
    %342 = tpu.matmul %340, %341, %cst_122 {dimension_numbers = #tpu.dot_dimension_numbers<[1], [0], [0], [1], [0, 0, 1, 1], [], []>} : vector<8x8xf32>, vector<8x8xf32>, vector<8x8xf32> -> vector<8x8xf32>
    %343 = vector.extract_strided_slice %301 {offsets = [0, 16], sizes = [8, 8], strides = [1, 1]} : vector<8x32xf32> to vector<8x8xf32>
    %344 = vector.extract_strided_slice %302 {offsets = [0, 16], sizes = [8, 8], strides = [1, 1]} : vector<8x32xf32> to vector<8x8xf32>
    %cst_123 = arith.constant dense<0.000000e+00> : vector<8x8xf32>
    %345 = tpu.matmul %343, %344, %cst_123 {dimension_numbers = #tpu.dot_dimension_numbers<[1], [1], [0], [0], [0, 0, 1, 0], [], []>} : vector<8x8xf32>, vector<8x8xf32>, vector<8x8xf32> -> vector<8x8xf32>
    %cst_124 = arith.constant 0.353553385 : f32
    %346 = vector.broadcast %cst_124 : f32 to vector<8x8xf32>
    %347 = arith.mulf %345, %346 : vector<8x8xf32>
    %348 = vector.broadcast %304 : vector<1x8xf32> to vector<8x8xf32>
    %349 = arith.addf %347, %348 : vector<8x8xf32>
    %cst_125 = arith.constant dense<0xFF800000> : vector<8xf32>
    %350 = vector.multi_reduction <maximumf>, %349, %cst_125 [1] : vector<8x8xf32> to vector<8xf32>
    %351 = vector.shape_cast %350 : vector<8xf32> to vector<8x1xf32>
    %352 = vector.broadcast %351 : vector<8x1xf32> to vector<8x8xf32>
    %353 = arith.subf %349, %352 : vector<8x8xf32>
    %354 = math.exp %353 : vector<8x8xf32>
    %cst_126 = arith.constant dense<0.000000e+00> : vector<8xf32>
    %355 = vector.multi_reduction <add>, %354, %cst_126 [1] : vector<8x8xf32> to vector<8xf32>
    %356 = vector.shape_cast %355 : vector<8xf32> to vector<8x1xf32>
    %357 = tpu.reciprocal %356 {approx = true} : vector<8x1xf32> -> vector<8x1xf32>
    %358 = vector.broadcast %357 : vector<8x1xf32> to vector<8x8xf32>
    %359 = arith.mulf %354, %358 : vector<8x8xf32>
    %360 = vector.extract_strided_slice %303 {offsets = [0, 16], sizes = [8, 8], strides = [1, 1]} : vector<8x32xf32> to vector<8x8xf32>
    %cst_127 = arith.constant dense<0.000000e+00> : vector<8x8xf32>
    %361 = tpu.matmul %359, %360, %cst_127 {dimension_numbers = #tpu.dot_dimension_numbers<[1], [0], [0], [1], [0, 0, 1, 1], [], []>} : vector<8x8xf32>, vector<8x8xf32>, vector<8x8xf32> -> vector<8x8xf32>
    %362 = vector.extract_strided_slice %301 {offsets = [0, 24], sizes = [8, 8], strides = [1, 1]} : vector<8x32xf32> to vector<8x8xf32>
    %363 = vector.extract_strided_slice %302 {offsets = [0, 24], sizes = [8, 8], strides = [1, 1]} : vector<8x32xf32> to vector<8x8xf32>
    %cst_128 = arith.constant dense<0.000000e+00> : vector<8x8xf32>
    %364 = tpu.matmul %362, %363, %cst_128 {dimension_numbers = #tpu.dot_dimension_numbers<[1], [1], [0], [0], [0, 0, 1, 0], [], []>} : vector<8x8xf32>, vector<8x8xf32>, vector<8x8xf32> -> vector<8x8xf32>
    %cst_129 = arith.constant 0.353553385 : f32
    %365 = vector.broadcast %cst_129 : f32 to vector<8x8xf32>
    %366 = arith.mulf %364, %365 : vector<8x8xf32>
    %367 = vector.broadcast %304 : vector<1x8xf32> to vector<8x8xf32>
    %368 = arith.addf %366, %367 : vector<8x8xf32>
    %cst_130 = arith.constant dense<0xFF800000> : vector<8xf32>
    %369 = vector.multi_reduction <maximumf>, %368, %cst_130 [1] : vector<8x8xf32> to vector<8xf32>
    %370 = vector.shape_cast %369 : vector<8xf32> to vector<8x1xf32>
    %371 = vector.broadcast %370 : vector<8x1xf32> to vector<8x8xf32>
    %372 = arith.subf %368, %371 : vector<8x8xf32>
    %373 = math.exp %372 : vector<8x8xf32>
    %cst_131 = arith.constant dense<0.000000e+00> : vector<8xf32>
    %374 = vector.multi_reduction <add>, %373, %cst_131 [1] : vector<8x8xf32> to vector<8xf32>
    %375 = vector.shape_cast %374 : vector<8xf32> to vector<8x1xf32>
    %376 = tpu.reciprocal %375 {approx = true} : vector<8x1xf32> -> vector<8x1xf32>
    %377 = vector.broadcast %376 : vector<8x1xf32> to vector<8x8xf32>
    %378 = arith.mulf %373, %377 : vector<8x8xf32>
    %379 = vector.extract_strided_slice %303 {offsets = [0, 24], sizes = [8, 8], strides = [1, 1]} : vector<8x32xf32> to vector<8x8xf32>
    %cst_132 = arith.constant dense<0.000000e+00> : vector<8x8xf32>
    %380 = tpu.matmul %378, %379, %cst_132 {dimension_numbers = #tpu.dot_dimension_numbers<[1], [0], [0], [1], [0, 0, 1, 1], [], []>} : vector<8x8xf32>, vector<8x8xf32>, vector<8x8xf32> -> vector<8x8xf32>
    %381 = tpu.concatenate %323, %342, %361, %380 in 1 : vector<8x8xf32>, vector<8x8xf32>, vector<8x8xf32>, vector<8x8xf32> -> vector<8x32xf32>
    %382 = vector.extract_strided_slice %298 {offsets = [8, 0], sizes = [8, 32], strides = [1, 1]} : vector<16x32xf32> to vector<8x32xf32>
    %383 = vector.extract_strided_slice %299 {offsets = [8, 0], sizes = [8, 32], strides = [1, 1]} : vector<16x32xf32> to vector<8x32xf32>
    %384 = vector.extract_strided_slice %300 {offsets = [8, 0], sizes = [8, 32], strides = [1, 1]} : vector<16x32xf32> to vector<8x32xf32>
    %385 = vector.extract_strided_slice %4 {offsets = [1, 0], sizes = [1, 8], strides = [1, 1]} : vector<2x8xf32> to vector<1x8xf32>
    %386 = vector.extract_strided_slice %382 {offsets = [0, 0], sizes = [8, 8], strides = [1, 1]} : vector<8x32xf32> to vector<8x8xf32>
    %387 = vector.extract_strided_slice %383 {offsets = [0, 0], sizes = [8, 8], strides = [1, 1]} : vector<8x32xf32> to vector<8x8xf32>
    %cst_133 = arith.constant dense<0.000000e+00> : vector<8x8xf32>
    %388 = tpu.matmul %386, %387, %cst_133 {dimension_numbers = #tpu.dot_dimension_numbers<[1], [1], [0], [0], [0, 0, 1, 0], [], []>} : vector<8x8xf32>, vector<8x8xf32>, vector<8x8xf32> -> vector<8x8xf32>
    %cst_134 = arith.constant 0.353553385 : f32
    %389 = vector.broadcast %cst_134 : f32 to vector<8x8xf32>
    %390 = arith.mulf %388, %389 : vector<8x8xf32>
    %391 = vector.broadcast %385 : vector<1x8xf32> to vector<8x8xf32>
    %392 = arith.addf %390, %391 : vector<8x8xf32>
    %cst_135 = arith.constant dense<0xFF800000> : vector<8xf32>
    %393 = vector.multi_reduction <maximumf>, %392, %cst_135 [1] : vector<8x8xf32> to vector<8xf32>
    %394 = vector.shape_cast %393 : vector<8xf32> to vector<8x1xf32>
    %395 = vector.broadcast %394 : vector<8x1xf32> to vector<8x8xf32>
    %396 = arith.subf %392, %395 : vector<8x8xf32>
    %397 = math.exp %396 : vector<8x8xf32>
    %cst_136 = arith.constant dense<0.000000e+00> : vector<8xf32>
    %398 = vector.multi_reduction <add>, %397, %cst_136 [1] : vector<8x8xf32> to vector<8xf32>
    %399 = vector.shape_cast %398 : vector<8xf32> to vector<8x1xf32>
    %400 = tpu.reciprocal %399 {approx = true} : vector<8x1xf32> -> vector<8x1xf32>
    %401 = vector.broadcast %400 : vector<8x1xf32> to vector<8x8xf32>
    %402 = arith.mulf %397, %401 : vector<8x8xf32>
    %403 = vector.extract_strided_slice %384 {offsets = [0, 0], sizes = [8, 8], strides = [1, 1]} : vector<8x32xf32> to vector<8x8xf32>
    %cst_137 = arith.constant dense<0.000000e+00> : vector<8x8xf32>
    %404 = tpu.matmul %402, %403, %cst_137 {dimension_numbers = #tpu.dot_dimension_numbers<[1], [0], [0], [1], [0, 0, 1, 1], [], []>} : vector<8x8xf32>, vector<8x8xf32>, vector<8x8xf32> -> vector<8x8xf32>
    %405 = vector.extract_strided_slice %382 {offsets = [0, 8], sizes = [8, 8], strides = [1, 1]} : vector<8x32xf32> to vector<8x8xf32>
    %406 = vector.extract_strided_slice %383 {offsets = [0, 8], sizes = [8, 8], strides = [1, 1]} : vector<8x32xf32> to vector<8x8xf32>
    %cst_138 = arith.constant dense<0.000000e+00> : vector<8x8xf32>
    %407 = tpu.matmul %405, %406, %cst_138 {dimension_numbers = #tpu.dot_dimension_numbers<[1], [1], [0], [0], [0, 0, 1, 0], [], []>} : vector<8x8xf32>, vector<8x8xf32>, vector<8x8xf32> -> vector<8x8xf32>
    %cst_139 = arith.constant 0.353553385 : f32
    %408 = vector.broadcast %cst_139 : f32 to vector<8x8xf32>
    %409 = arith.mulf %407, %408 : vector<8x8xf32>
    %410 = vector.broadcast %385 : vector<1x8xf32> to vector<8x8xf32>
    %411 = arith.addf %409, %410 : vector<8x8xf32>
    %cst_140 = arith.constant dense<0xFF800000> : vector<8xf32>
    %412 = vector.multi_reduction <maximumf>, %411, %cst_140 [1] : vector<8x8xf32> to vector<8xf32>
    %413 = vector.shape_cast %412 : vector<8xf32> to vector<8x1xf32>
    %414 = vector.broadcast %413 : vector<8x1xf32> to vector<8x8xf32>
    %415 = arith.subf %411, %414 : vector<8x8xf32>
    %416 = math.exp %415 : vector<8x8xf32>
    %cst_141 = arith.constant dense<0.000000e+00> : vector<8xf32>
    %417 = vector.multi_reduction <add>, %416, %cst_141 [1] : vector<8x8xf32> to vector<8xf32>
    %418 = vector.shape_cast %417 : vector<8xf32> to vector<8x1xf32>
    %419 = tpu.reciprocal %418 {approx = true} : vector<8x1xf32> -> vector<8x1xf32>
    %420 = vector.broadcast %419 : vector<8x1xf32> to vector<8x8xf32>
    %421 = arith.mulf %416, %420 : vector<8x8xf32>
    %422 = vector.extract_strided_slice %384 {offsets = [0, 8], sizes = [8, 8], strides = [1, 1]} : vector<8x32xf32> to vector<8x8xf32>
    %cst_142 = arith.constant dense<0.000000e+00> : vector<8x8xf32>
    %423 = tpu.matmul %421, %422, %cst_142 {dimension_numbers = #tpu.dot_dimension_numbers<[1], [0], [0], [1], [0, 0, 1, 1], [], []>} : vector<8x8xf32>, vector<8x8xf32>, vector<8x8xf32> -> vector<8x8xf32>
    %424 = vector.extract_strided_slice %382 {offsets = [0, 16], sizes = [8, 8], strides = [1, 1]} : vector<8x32xf32> to vector<8x8xf32>
    %425 = vector.extract_strided_slice %383 {offsets = [0, 16], sizes = [8, 8], strides = [1, 1]} : vector<8x32xf32> to vector<8x8xf32>
    %cst_143 = arith.constant dense<0.000000e+00> : vector<8x8xf32>
    %426 = tpu.matmul %424, %425, %cst_143 {dimension_numbers = #tpu.dot_dimension_numbers<[1], [1], [0], [0], [0, 0, 1, 0], [], []>} : vector<8x8xf32>, vector<8x8xf32>, vector<8x8xf32> -> vector<8x8xf32>
    %cst_144 = arith.constant 0.353553385 : f32
    %427 = vector.broadcast %cst_144 : f32 to vector<8x8xf32>
    %428 = arith.mulf %426, %427 : vector<8x8xf32>
    %429 = vector.broadcast %385 : vector<1x8xf32> to vector<8x8xf32>
    %430 = arith.addf %428, %429 : vector<8x8xf32>
    %cst_145 = arith.constant dense<0xFF800000> : vector<8xf32>
    %431 = vector.multi_reduction <maximumf>, %430, %cst_145 [1] : vector<8x8xf32> to vector<8xf32>
    %432 = vector.shape_cast %431 : vector<8xf32> to vector<8x1xf32>
    %433 = vector.broadcast %432 : vector<8x1xf32> to vector<8x8xf32>
    %434 = arith.subf %430, %433 : vector<8x8xf32>
    %435 = math.exp %434 : vector<8x8xf32>
    %cst_146 = arith.constant dense<0.000000e+00> : vector<8xf32>
    %436 = vector.multi_reduction <add>, %435, %cst_146 [1] : vector<8x8xf32> to vector<8xf32>
    %437 = vector.shape_cast %436 : vector<8xf32> to vector<8x1xf32>
    %438 = tpu.reciprocal %437 {approx = true} : vector<8x1xf32> -> vector<8x1xf32>
    %439 = vector.broadcast %438 : vector<8x1xf32> to vector<8x8xf32>
    %440 = arith.mulf %435, %439 : vector<8x8xf32>
    %441 = vector.extract_strided_slice %384 {offsets = [0, 16], sizes = [8, 8], strides = [1, 1]} : vector<8x32xf32> to vector<8x8xf32>
    %cst_147 = arith.constant dense<0.000000e+00> : vector<8x8xf32>
    %442 = tpu.matmul %440, %441, %cst_147 {dimension_numbers = #tpu.dot_dimension_numbers<[1], [0], [0], [1], [0, 0, 1, 1], [], []>} : vector<8x8xf32>, vector<8x8xf32>, vector<8x8xf32> -> vector<8x8xf32>
    %443 = vector.extract_strided_slice %382 {offsets = [0, 24], sizes = [8, 8], strides = [1, 1]} : vector<8x32xf32> to vector<8x8xf32>
    %444 = vector.extract_strided_slice %383 {offsets = [0, 24], sizes = [8, 8], strides = [1, 1]} : vector<8x32xf32> to vector<8x8xf32>
    %cst_148 = arith.constant dense<0.000000e+00> : vector<8x8xf32>
    %445 = tpu.matmul %443, %444, %cst_148 {dimension_numbers = #tpu.dot_dimension_numbers<[1], [1], [0], [0], [0, 0, 1, 0], [], []>} : vector<8x8xf32>, vector<8x8xf32>, vector<8x8xf32> -> vector<8x8xf32>
    %cst_149 = arith.constant 0.353553385 : f32
    %446 = vector.broadcast %cst_149 : f32 to vector<8x8xf32>
    %447 = arith.mulf %445, %446 : vector<8x8xf32>
    %448 = vector.broadcast %385 : vector<1x8xf32> to vector<8x8xf32>
    %449 = arith.addf %447, %448 : vector<8x8xf32>
    %cst_150 = arith.constant dense<0xFF800000> : vector<8xf32>
    %450 = vector.multi_reduction <maximumf>, %449, %cst_150 [1] : vector<8x8xf32> to vector<8xf32>
    %451 = vector.shape_cast %450 : vector<8xf32> to vector<8x1xf32>
    %452 = vector.broadcast %451 : vector<8x1xf32> to vector<8x8xf32>
    %453 = arith.subf %449, %452 : vector<8x8xf32>
    %454 = math.exp %453 : vector<8x8xf32>
    %cst_151 = arith.constant dense<0.000000e+00> : vector<8xf32>
    %455 = vector.multi_reduction <add>, %454, %cst_151 [1] : vector<8x8xf32> to vector<8xf32>
    %456 = vector.shape_cast %455 : vector<8xf32> to vector<8x1xf32>
    %457 = tpu.reciprocal %456 {approx = true} : vector<8x1xf32> -> vector<8x1xf32>
    %458 = vector.broadcast %457 : vector<8x1xf32> to vector<8x8xf32>
    %459 = arith.mulf %454, %458 : vector<8x8xf32>
    %460 = vector.extract_strided_slice %384 {offsets = [0, 24], sizes = [8, 8], strides = [1, 1]} : vector<8x32xf32> to vector<8x8xf32>
    %cst_152 = arith.constant dense<0.000000e+00> : vector<8x8xf32>
    %461 = tpu.matmul %459, %460, %cst_152 {dimension_numbers = #tpu.dot_dimension_numbers<[1], [0], [0], [1], [0, 0, 1, 1], [], []>} : vector<8x8xf32>, vector<8x8xf32>, vector<8x8xf32> -> vector<8x8xf32>
    %462 = tpu.concatenate %404, %423, %442, %461 in 1 : vector<8x8xf32>, vector<8x8xf32>, vector<8x8xf32>, vector<8x8xf32> -> vector<8x32xf32>
    %463 = tpu.concatenate %381, %462 in 0 : vector<8x32xf32>, vector<8x32xf32> -> vector<16x32xf32>
    %c1_153 = arith.constant 1 : index
    %c0_154 = arith.constant 0 : index
    %c0_155 = arith.constant 0 : index
    %464 = vector.load %arg6[%c1_153, %c0_154, %c0_155] : memref<2x32x32xf32, #tpu.memory_space<vmem>>, vector<1x32x32xf32>
    %465 = vector.shape_cast %464 : vector<1x32x32xf32> to vector<32x32xf32>
    %cst_156 = arith.constant dense<0.000000e+00> : vector<16x32xf32>
    %466 = tpu.matmul %463, %465, %cst_156 {dimension_numbers = #tpu.dot_dimension_numbers<[1], [0], [0], [1], [0, 0, 1, 1], [], []>} : vector<16x32xf32>, vector<32x32xf32>, vector<16x32xf32> -> vector<16x32xf32>
    %c1_157 = arith.constant 1 : index
    %c0_158 = arith.constant 0 : index
    %c0_159 = arith.constant 0 : index
    %467 = vector.load %arg7[%c1_157, %c0_158, %c0_159] : memref<2x1x32xf32, #tpu.memory_space<vmem>>, vector<1x1x32xf32>
    %468 = vector.shape_cast %467 : vector<1x1x32xf32> to vector<1x32xf32>
    %469 = vector.broadcast %468 : vector<1x32xf32> to vector<16x32xf32>
    %470 = arith.addf %466, %469 : vector<16x32xf32>
    %471 = arith.addf %470, %290 : vector<16x32xf32>
    %c1_160 = arith.constant 1 : index
    %c0_161 = arith.constant 0 : index
    %c0_162 = arith.constant 0 : index
    %472 = vector.load %arg8[%c1_160, %c0_161, %c0_162] : memref<2x1x32xf32, #tpu.memory_space<vmem>>, vector<1x1x32xf32>
    %473 = vector.shape_cast %472 : vector<1x1x32xf32> to vector<1x32xf32>
    %c1_163 = arith.constant 1 : index
    %c0_164 = arith.constant 0 : index
    %c0_165 = arith.constant 0 : index
    %474 = vector.load %arg9[%c1_163, %c0_164, %c0_165] : memref<2x1x32xf32, #tpu.memory_space<vmem>>, vector<1x1x32xf32>
    %475 = vector.shape_cast %474 : vector<1x1x32xf32> to vector<1x32xf32>
    %cst_166 = arith.constant dense<0.000000e+00> : vector<16xf32>
    %476 = vector.multi_reduction <add>, %471, %cst_166 [1] : vector<16x32xf32> to vector<16xf32>
    %477 = vector.shape_cast %476 : vector<16xf32> to vector<16x1xf32>
    %cst_167 = arith.constant 3.200000e+01 : f32
    %478 = vector.broadcast %cst_167 : f32 to vector<16x1xf32>
    %479 = arith.divf %477, %478 : vector<16x1xf32>
    %480 = vector.broadcast %479 : vector<16x1xf32> to vector<16x32xf32>
    %481 = arith.subf %471, %480 : vector<16x32xf32>
    %482 = arith.mulf %481, %481 : vector<16x32xf32>
    %cst_168 = arith.constant dense<0.000000e+00> : vector<16xf32>
    %483 = vector.multi_reduction <add>, %482, %cst_168 [1] : vector<16x32xf32> to vector<16xf32>
    %484 = vector.shape_cast %483 : vector<16xf32> to vector<16x1xf32>
    %cst_169 = arith.constant 3.200000e+01 : f32
    %485 = vector.broadcast %cst_169 : f32 to vector<16x1xf32>
    %486 = arith.divf %484, %485 : vector<16x1xf32>
    %487 = vector.broadcast %479 : vector<16x1xf32> to vector<16x32xf32>
    %488 = arith.subf %471, %487 : vector<16x32xf32>
    %cst_170 = arith.constant 9.99999996E-13 : f32
    %489 = vector.broadcast %cst_170 : f32 to vector<16x1xf32>
    %490 = arith.addf %486, %489 : vector<16x1xf32>
    %491 = math.rsqrt %490 : vector<16x1xf32>
    %492 = vector.broadcast %491 : vector<16x1xf32> to vector<16x32xf32>
    %493 = arith.mulf %488, %492 : vector<16x32xf32>
    %494 = vector.broadcast %473 : vector<1x32xf32> to vector<16x32xf32>
    %495 = arith.mulf %493, %494 : vector<16x32xf32>
    %496 = vector.broadcast %475 : vector<1x32xf32> to vector<16x32xf32>
    %497 = arith.addf %495, %496 : vector<16x32xf32>
    %c1_171 = arith.constant 1 : index
    %c0_172 = arith.constant 0 : index
    %c0_173 = arith.constant 0 : index
    %498 = vector.load %arg10[%c1_171, %c0_172, %c0_173] : memref<2x32x64xf32, #tpu.memory_space<vmem>>, vector<1x32x64xf32>
    %499 = vector.shape_cast %498 : vector<1x32x64xf32> to vector<32x64xf32>
    %cst_174 = arith.constant dense<0.000000e+00> : vector<16x64xf32>
    %500 = tpu.matmul %497, %499, %cst_174 {dimension_numbers = #tpu.dot_dimension_numbers<[1], [0], [0], [1], [0, 0, 1, 1], [], []>} : vector<16x32xf32>, vector<32x64xf32>, vector<16x64xf32> -> vector<16x64xf32>
    %c1_175 = arith.constant 1 : index
    %c0_176 = arith.constant 0 : index
    %c0_177 = arith.constant 0 : index
    %501 = vector.load %arg11[%c1_175, %c0_176, %c0_177] : memref<2x1x64xf32, #tpu.memory_space<vmem>>, vector<1x1x64xf32>
    %502 = vector.shape_cast %501 : vector<1x1x64xf32> to vector<1x64xf32>
    %503 = vector.broadcast %502 : vector<1x64xf32> to vector<16x64xf32>
    %504 = arith.addf %500, %503 : vector<16x64xf32>
    %cst_178 = arith.constant 5.000000e-01 : f32
    %505 = vector.broadcast %cst_178 : f32 to vector<16x64xf32>
    %506 = arith.mulf %505, %504 : vector<16x64xf32>
    %cst_179 = arith.constant 4.471500e-02 : f32
    %507 = vector.broadcast %cst_179 : f32 to vector<16x64xf32>
    %508 = arith.mulf %507, %504 : vector<16x64xf32>
    %509 = arith.mulf %508, %504 : vector<16x64xf32>
    %510 = arith.mulf %509, %504 : vector<16x64xf32>
    %511 = arith.addf %504, %510 : vector<16x64xf32>
    %cst_180 = arith.constant 0.797884583 : f32
    %512 = vector.broadcast %cst_180 : f32 to vector<16x64xf32>
    %513 = arith.mulf %512, %511 : vector<16x64xf32>
    %514 = math.tanh %513 : vector<16x64xf32>
    %cst_181 = arith.constant 1.000000e+00 : f32
    %515 = vector.broadcast %cst_181 : f32 to vector<16x64xf32>
    %516 = arith.addf %515, %514 : vector<16x64xf32>
    %517 = arith.mulf %506, %516 : vector<16x64xf32>
    %c1_182 = arith.constant 1 : index
    %c0_183 = arith.constant 0 : index
    %c0_184 = arith.constant 0 : index
    %518 = vector.load %arg12[%c1_182, %c0_183, %c0_184] : memref<2x64x32xf32, #tpu.memory_space<vmem>>, vector<1x64x32xf32>
    %519 = vector.shape_cast %518 : vector<1x64x32xf32> to vector<64x32xf32>
    %cst_185 = arith.constant dense<0.000000e+00> : vector<16x32xf32>
    %520 = tpu.matmul %517, %519, %cst_185 {dimension_numbers = #tpu.dot_dimension_numbers<[1], [0], [0], [1], [0, 0, 1, 1], [], []>} : vector<16x64xf32>, vector<64x32xf32>, vector<16x32xf32> -> vector<16x32xf32>
    %c1_186 = arith.constant 1 : index
    %c0_187 = arith.constant 0 : index
    %c0_188 = arith.constant 0 : index
    %521 = vector.load %arg13[%c1_186, %c0_187, %c0_188] : memref<2x1x32xf32, #tpu.memory_space<vmem>>, vector<1x1x32xf32>
    %522 = vector.shape_cast %521 : vector<1x1x32xf32> to vector<1x32xf32>
    %523 = vector.broadcast %522 : vector<1x32xf32> to vector<16x32xf32>
    %524 = arith.addf %520, %523 : vector<16x32xf32>
    %525 = arith.addf %524, %497 : vector<16x32xf32>
    %c1_189 = arith.constant 1 : index
    %c0_190 = arith.constant 0 : index
    %c0_191 = arith.constant 0 : index
    %526 = vector.load %arg14[%c1_189, %c0_190, %c0_191] : memref<2x1x32xf32, #tpu.memory_space<vmem>>, vector<1x1x32xf32>
    %527 = vector.shape_cast %526 : vector<1x1x32xf32> to vector<1x32xf32>
    %c1_192 = arith.constant 1 : index
    %c0_193 = arith.constant 0 : index
    %c0_194 = arith.constant 0 : index
    %528 = vector.load %arg15[%c1_192, %c0_193, %c0_194] : memref<2x1x32xf32, #tpu.memory_space<vmem>>, vector<1x1x32xf32>
    %529 = vector.shape_cast %528 : vector<1x1x32xf32> to vector<1x32xf32>
    %cst_195 = arith.constant dense<0.000000e+00> : vector<16xf32>
    %530 = vector.multi_reduction <add>, %525, %cst_195 [1] : vector<16x32xf32> to vector<16xf32>
    %531 = vector.shape_cast %530 : vector<16xf32> to vector<16x1xf32>
    %cst_196 = arith.constant 3.200000e+01 : f32
    %532 = vector.broadcast %cst_196 : f32 to vector<16x1xf32>
    %533 = arith.divf %531, %532 : vector<16x1xf32>
    %534 = vector.broadcast %533 : vector<16x1xf32> to vector<16x32xf32>
    %535 = arith.subf %525, %534 : vector<16x32xf32>
    %536 = arith.mulf %535, %535 : vector<16x32xf32>
    %cst_197 = arith.constant dense<0.000000e+00> : vector<16xf32>
    %537 = vector.multi_reduction <add>, %536, %cst_197 [1] : vector<16x32xf32> to vector<16xf32>
    %538 = vector.shape_cast %537 : vector<16xf32> to vector<16x1xf32>
    %cst_198 = arith.constant 3.200000e+01 : f32
    %539 = vector.broadcast %cst_198 : f32 to vector<16x1xf32>
    %540 = arith.divf %538, %539 : vector<16x1xf32>
    %541 = vector.broadcast %533 : vector<16x1xf32> to vector<16x32xf32>
    %542 = arith.subf %525, %541 : vector<16x32xf32>
    %cst_199 = arith.constant 9.99999996E-13 : f32
    %543 = vector.broadcast %cst_199 : f32 to vector<16x1xf32>
    %544 = arith.addf %540, %543 : vector<16x1xf32>
    %545 = math.rsqrt %544 : vector<16x1xf32>
    %546 = vector.broadcast %545 : vector<16x1xf32> to vector<16x32xf32>
    %547 = arith.mulf %542, %546 : vector<16x32xf32>
    %548 = vector.broadcast %527 : vector<1x32xf32> to vector<16x32xf32>
    %549 = arith.mulf %547, %548 : vector<16x32xf32>
    %550 = vector.broadcast %529 : vector<1x32xf32> to vector<16x32xf32>
    %551 = arith.addf %549, %550 : vector<16x32xf32>
    %552 = vector.extract_strided_slice %551 {offsets = [0, 0], sizes = [1, 32], strides = [1, 1]} : vector<16x32xf32> to vector<1x32xf32>
    %553 = vector.extract_strided_slice %551 {offsets = [8, 0], sizes = [1, 32], strides = [1, 1]} : vector<16x32xf32> to vector<1x32xf32>
    %554 = tpu.concatenate %552, %553 in 0 : vector<1x32xf32>, vector<1x32xf32> -> vector<2x32xf32>
    %c0_200 = arith.constant 0 : index
    %c0_201 = arith.constant 0 : index
    %555 = vector.load %arg16[%c0_200, %c0_201] : memref<32x32xf32, #tpu.memory_space<vmem>>, vector<32x32xf32>
    %cst_202 = arith.constant dense<0.000000e+00> : vector<2x32xf32>
    %556 = tpu.matmul %554, %555, %cst_202 {dimension_numbers = #tpu.dot_dimension_numbers<[1], [0], [0], [1], [0, 0, 1, 1], [], []>} : vector<2x32xf32>, vector<32x32xf32>, vector<2x32xf32> -> vector<2x32xf32>
    %c0_203 = arith.constant 0 : index
    %c0_204 = arith.constant 0 : index
    %557 = vector.load %arg17[%c0_203, %c0_204] : memref<1x32xf32, #tpu.memory_space<vmem>>, vector<1x32xf32>
    %558 = vector.broadcast %557 : vector<1x32xf32> to vector<2x32xf32>
    %559 = arith.addf %556, %558 : vector<2x32xf32>
    %560 = math.tanh %559 : vector<2x32xf32>
    %c0_205 = arith.constant 0 : index
    %c0_206 = arith.constant 0 : index
    %561 = vector.load %arg18[%c0_205, %c0_206] : memref<32x2xf32, #tpu.memory_space<vmem>>, vector<32x2xf32>
    %cst_207 = arith.constant dense<0.000000e+00> : vector<2x2xf32>
    %562 = tpu.matmul %560, %561, %cst_207 {dimension_numbers = #tpu.dot_dimension_numbers<[1], [0], [0], [1], [0, 0, 1, 1], [], []>} : vector<2x32xf32>, vector<32x2xf32>, vector<2x2xf32> -> vector<2x2xf32>
    %c0_208 = arith.constant 0 : index
    %c0_209 = arith.constant 0 : index
    %563 = vector.load %arg19[%c0_208, %c0_209] : memref<1x2xf32, #tpu.memory_space<vmem>>, vector<1x2xf32>
    %564 = vector.broadcast %563 : vector<1x2xf32> to vector<2x2xf32>
    %565 = arith.addf %562, %564 : vector<2x2xf32>
    %c0_210 = arith.constant 0 : index
    %c0_211 = arith.constant 0 : index
    %566 = vector.load %arg20[%c0_210, %c0_211] : memref<2x2xf32, #tpu.memory_space<vmem>>, vector<2x2xf32>
    tpu.vector_store %arg20[%c0_210, %c0_211], %565 {strides = array<i32>} : memref<2x2xf32, #tpu.memory_space<vmem>>, vector<2x2xf32>,
    return
  }
}

</mosaic_0001>

<bundles_post_ra>
// kernel: tpu_custom_call.1
= control target key start
LH: loop header
LB: loop body
LE: loop exit
PB: predicated region body
PF: predicated region fallthrough
CT: control target
= control target key end

     0   :  { %s3131_s0 = inlined_call_operand.hbm [shape: f32[16,32], index: 0, kind: input, shape index: {}]   ;;  %s3132_s1 = inlined_call_operand.vmem [shape: f32[2,8], index: 1, kind: input, shape index: {}]   ;;  %s3133_s2 = inlined_call_operand.hbm [shape: f32[1,32], index: 2, kind: input, shape index: {}]   ;;  %s3134_s3 = inlined_call_operand.hbm [shape: f32[1,32], index: 3, kind: input, shape index: {}]   ;;  %s3135_s4 = inlined_call_operand.vmem [shape: f32[2,32,96], index: 4, kind: input, shape index: {}]   ;;  %s3136_s5 = inlined_call_operand.hbm [shape: f32[2,1,96], index: 5, kind: input, shape index: {}]   ;;  %s3137_s6 = inlined_call_operand.vmem [shape: f32[2,32,32], index: 6, kind: input, shape index: {}]   ;;  %s3138_s7 = inlined_call_operand.vmem [shape: f32[2,1,32], index: 7, kind: input, shape index: {}]   ;;  %s3139_s8 = inlined_call_operand.hbm [shape: f32[2,1,32], index: 8, kind: input, shape index: {}]   ;;  %s3140_s9 = inlined_call_operand.vmem [shape: f32[2,1,32], index: 9, kind: input, shape index: {}]   ;;  %s3141_s10 = inlined_call_operand.vmem [shape: f32[2,32,64], index: 10, kind: input, shape index: {}]   ;;  %s3142_s11 = inlined_call_operand.vmem [shape: f32[2,1,64], index: 11, kind: input, shape index: {}]   ;;  %s3143_s12 = inlined_call_operand.vmem [shape: f32[2,64,32], index: 12, kind: input, shape index: {}]   ;;  %s3144_s13 = inlined_call_operand.vmem [shape: f32[2,1,32], index: 13, kind: input, shape index: {}]   ;;  %s3145_s14 = inlined_call_operand.hbm [shape: f32[2,1,32], index: 14, kind: input, shape index: {}]   ;;  %s3146_s15 = inlined_call_operand.vmem [shape: f32[2,1,32], index: 15, kind: input, shape index: {}]   ;;  %s3147_s16 = inlined_call_operand.vmem [shape: f32[32,32], index: 16, kind: input, shape index: {}]   ;;  %s3148_s17 = inlined_call_operand.vmem [shape: f32[1,32], index: 17, kind: input, shape index: {}]   ;;  %s3149_s18 = inlined_call_operand.vmem [shape: f32[32,2], index: 18, kind: input, shape index: {}]   ;;  %s3150_s19 = inlined_call_operand.vmem [shape: f32[1,2], index: 19, kind: input, shape index: {}]   ;;  %s3151_s20 = inlined_call_operand.hbm [shape: f32[2,2], index: 20, kind: output, shape index: {}]  }
   0x1   :  { %3163 = sst [smem:[#allocation19_spill]] %s3131_s0 }
   0x2   :  { %3164 = sst [smem:[#allocation20_spill]] %s3132_s1 }
   0x3   :  { %3165 = sst [smem:[#allocation21_spill]] %s3133_s2 }
   0x4   :  { %3166 = sst [smem:[#allocation22_spill]] %s3134_s3 }
   0x5   :  { %3167 = sst [smem:[#allocation23_spill]] %s3135_s4 }
   0x6   :  { %3168 = sst [smem:[#allocation24_spill]] %s3150_s19 }
   0x7   :  { %3169 = sst [smem:[#allocation25_spill]] %s3151_s20 }
   0x8   :  { %25 = vsyncpa [#allocation3], 0 }
   0x9   :  { %26 = vsyncpa [#allocation6], 0 }
   0xa   :  { %27 = vsyncpa [#allocation9], 0 }
   0xb   :  { %28 = vsyncpa [#allocation12], 0  ;;  %s3170_s23 = sld [smem:[#allocation21_spill]] }
  0x11   :  { %s50_s24 = sshll.u32 %s3170_s23, 4  ;;  %s51_s24 = int_to_ptr.hbm [resolvable:$true] %s50_s24 }
  0x12   :  { %29 = vsyncpa [#allocation4], 0  ;;  %s2442_s2 = smov [#allocation5]   ;;  %s73_s27 = sshll.u32 %s3136_s5, 4  ;;  %s74_s27 = int_to_ptr.hbm [resolvable:$true] %s73_s27 }
  0x13   :  { %s52_s25 = sshll.u32 %s2442_s2, 4  ;;  %s2443_s28 = smov [#allocation8]   ;;  %s53_s25 = int_to_ptr.vmem [resolvable:$true] %s52_s25 }
  0x14   :  { %55 = dma.hbm_to_vmem [thread:$0]  %s51_s24, 16, %s53_s25, [#allocation6]  }
  0x15   :  { %s75_s4 = sshll.u32 %s2443_s28, 4  ;;  %s3159_s29 = smov 16   ;;  %s76_s4 = int_to_ptr.vmem [resolvable:$true] %s75_s4 }
  0x16   :  { %s2445_s30 = smov 1   ;;  %s3171_s1 = sld [smem:[#allocation19_spill]] }
  0x17   :  { %81 = dma.hbm_to_vmem [thread:$0]  %s74_s27, 32, %s76_s4, [#allocation9], %s3159_s29, %s3159_s29, %s2445_s30  }
  0x18   :  { %s2446_s23 = smov [#allocation2]   ;;  %s3172_s25 = sld [smem:[#allocation22_spill]] }
  0x19   :  { %s36_s2 = sshll.u32 %s2446_s23, 4  ;;  %s2447_s26 = smov 128   ;;  %s37_s2 = int_to_ptr.vmem [resolvable:$true] %s36_s2 }
  0x1a   :  { %s3155_s28 = smov 8   ;;  %s2449_s20 = smov [#allocation7]  }
  0x1b   :  { %s63_s19 = sshll.u32 %s2449_s20, 4  ;;  %s90_s0 = sshll.u32 %s3139_s8, 4  ;;  %s64_s19 = int_to_ptr.vmem [resolvable:$true] %s63_s19  ;;  %s91_s0 = int_to_ptr.hbm [resolvable:$true] %s90_s0 }
  0x1c   :  { %s34_s22 = sshll.u32 %s3171_s1, 4  ;;  %s113_s23 = sshll.u32 %s3145_s14, 4  ;;  %s35_s22 = int_to_ptr.hbm [resolvable:$true] %s34_s22  ;;  %s114_s23 = int_to_ptr.hbm [resolvable:$true] %s113_s23 }
  0x1d   :  { %42 = dma.hbm_to_vmem [thread:$0]  %s35_s22, 256, %s37_s2, [#allocation3], %s2447_s26, %s2447_s26, %s3155_s28  }
  0x1e   :  { %s61_s3 = sshll.u32 %s3172_s25, 4  ;;  %s2450_s5 = smov [#allocation10]   ;;  %s62_s3 = int_to_ptr.hbm [resolvable:$true] %s61_s3 }
  0x1f   :  { %66 = dma.hbm_to_vmem [thread:$0]  %s62_s3, 16, %s64_s19, [#allocation6]  }
  0x20   :  { %s92_s24 = sshll.u32 %s2450_s5, 4  ;;  %s2451_s20 = smov [#allocation11]   ;;  %s93_s24 = int_to_ptr.vmem [resolvable:$true] %s92_s24 }
  0x21   :  { %98 = dma.hbm_to_vmem [thread:$0]  %s91_s0, 32, %s93_s24, [#allocation9], %s3159_s29, %s3159_s29, %s2445_s30  }
  0x22   :  { %s115_s22 = sshll.u32 %s2451_s20, 4  ;;  %s116_s22 = int_to_ptr.vmem [resolvable:$true] %s115_s22 }
  0x23   :  { %121 = dma.hbm_to_vmem [thread:$0]  %s114_s23, 32, %s116_s22, [#allocation12], %s3159_s29, %s3159_s29, %s2445_s30  }
  0x24   :  { %2432 = dma.done.wait [#allocation3], 256  }
  0x25   :  { %2433 = vsyncadd [#allocation3], 4294967040 }
  0x26   :  { %2434 = dma.done.wait [#allocation6], 32  }
  0x27   :  { %2435 = vsyncadd [#allocation6], 4294967264 }
  0x28   :  { %2436 = dma.done.wait [#allocation9], 64  }
  0x29   :  { %2437 = vsyncadd [#allocation9], 4294967232 }
  0x2a   :  { %2438 = dma.done.wait [#allocation12], 32  }
  0x2b   :  { %2439 = vsyncadd [#allocation12], 4294967264  ;;  %vm163_vm0 = vcmask 261120   ;;  %v159_v0 = vld [vmem:[#allocation2] sm:$0xff]  ;;  %v160_v1 = vld [vmem:[#allocation2 + $0x8] sm:$0xff]  ;;  %v2452_v4 = vmov 32.0  }
  0x2c   :  { %v164_v2 = vsel %vm163_vm0, %v159_v0, 0.0  ;;  %v167_v3 = vsel %vm163_vm0, %v160_v1, 0.0  ;;  %2168 = vrcp.f32 %v2452_v4  ;;  %s3173_s19 = sld [smem:[#allocation23_spill]]  ;;  %v2148_v42 = vld [vmem:[#allocation5] ss:$0 sm:$0xff]  ;;  %s2453_s4 = smov 120  }
  0x2d   :  { %165 = vadd.xlane.f32.xlu0 %v164_v2  ;;  %168 = vadd.xlane.f32.xlu1 %v167_v3  ;;  %v2149_v46 = vld [vmem:[#allocation7] ss:$0 sm:$0xff]  ;;  %v2629_v53 = vld [vmem:[#allocation8] ss:$0 sm:$0xff]  ;;  %s2454_s0 = smov 96   ;;  %s2455_s21 = smov 64  }
  0x2e   :  { %s2456_s1 = smov 88   ;;  %s2457_s23 = smov 80   ;;  %vm265_vm8 = vcmask 64512   ;;  %vm544_vm9 = vcmask 130048   ;;  %vm546_vm10 = vcmask 195584   ;;  %vm993_vm14 = vcmask 523264  }
  0x2f   :  { %s2458_s5 = smov 72   ;;  %s3153_s24 = smov 104  }
  0x30   :  { %s3174_s8 = sld [smem:[#allocation20_spill]]  ;;  %s2460_s14 = smov 112  }
  0x31   :  { %s2461_s30 = smov 56   ;;  %s2462_s2 = smov 40  }
  0x32   :  { %v2169_v5 = vpop.eup %2168  ;;  %v228_v21 = vld [vmem:[%s3173_s19 + $0x18] sm:$0xff]  ;;  %v227_v22 = vld [vmem:[%s3173_s19 + $0x10] sm:$0xff]  ;;  %v226_v23 = vld [vmem:[%s3173_s19 + $0x8] sm:$0xff]  ;;  %s3157_s25 = smov 48   ;;  %s3161_s3 = smov 24  }
  0x33   :  { %v171_v6 = vmul.f32 32.0, %v2169_v5  ;;  %vm175_vm1 = vweird.f32 %v2169_v5  ;;  %251 = vmatpush.msra.mxu0 %v228_v21  ;;  %v225_v24 = vld [vmem:[%s3173_s19] sm:$0xff]  ;;  %s3180_s26 = sld [smem:[#allocation24_spill]] }
  0x35   :  { %v172_v7 = vsub.f32 1.0, %v171_v6  ;;  %252 = vmatpush.msra.mxu0 %v227_v22 }
  0x36   :  { %v156_v61 = vld [vmem:[%s3174_s8] sm:$0x3] }
  0x37   :  { %v173_v8 = vmul.f32 %v2169_v5, %v172_v7  ;;  %253 = vmatpush.msra.mxu0 %v226_v23  ;;  %v157_v62 = vsub.f32 1.0, %v156_v61 }
  0x39   :  { %v174_v9 = vadd.f32 %v2169_v5, %v173_v8  ;;  %254 = vmatpush.msra.mxu0 %v225_v24 }
  0x3b   :  { %v2601_v10 = vsel %vm175_vm1, %v2169_v5, %v174_v9 }
  0xa0   :  { %v166_v11 = vpop.xlane.xlu0 %165  ;;  %v169_v12 = vpop.xlane.xlu1 %168 }
  0xa1   :  { %v177_v13 = vmul.f32 %v2601_v10, %v166_v11  ;;  %v178_v14 = vmul.f32 %v2601_v10, %v169_v12 }
  0xa3   :  { %v179_v15 = vsub.f32 %v159_v0, %v177_v13  ;;  %v180_v16 = vsub.f32 %v160_v1, %v178_v14  ;;  %v2657_v0 = vmul.f32 -10000.0, %v157_v62 }
  0xa5   :  { %v181_v17 = vmul.f32 %v179_v15, %v179_v15  ;;  %v182_v18 = vmul.f32 %v180_v16, %v180_v16  ;;  %v2660_v1 = vperm.slane %v2657_v0, 0 }
  0xa7   :  { %v183_v19 = vsel %vm163_vm0, %v181_v17, 0.0  ;;  %v186_v20 = vsel %vm163_vm0, %v182_v18, 0.0 }
  0xa8   :  { %184 = vadd.xlane.f32.xlu0 %v183_v19  ;;  %187 = vadd.xlane.f32.xlu1 %v186_v20 }
 0x11b   :  { %v185_v25 = vpop.xlane.xlu0 %184  ;;  %v188_v26 = vpop.xlane.xlu1 %187 }
 0x11c   :  { %v189_v27 = vmul.f32 %v185_v25, %v2601_v10  ;;  %v190_v28 = vmul.f32 %v188_v26, %v2601_v10 }
 0x11e   :  { %v191_v29 = vadd.f32 1e-12, %v189_v27  ;;  %v192_v30 = vadd.f32 1e-12, %v190_v28 }
 0x120   :  { %2170 = vrsqrt.f32 %v191_v29  ;;  %vm209_vm2 = vweird.f32 %v192_v30  ;;  %vm199_vm5 = vweird.f32 %v191_v29 }
 0x121   :  { %2172 = vrsqrt.f32 %v192_v30 }
 0x126   :  { %v2171_v31 = vpop.eup %2170 }
 0x127   :  { %v2173_v32 = vpop.eup %2172  ;;  %v194_v33 = vmul.f32 %v2171_v31, %v191_v29  ;;  %vm200_vm4 = vweird.f32 %v2171_v31 }
 0x128   :  { %v204_v34 = vmul.f32 %v2173_v32, %v192_v30  ;;  %vm210_vm3 = vweird.f32 %v2173_v32  ;;  %vm201_vm7 = vmor %vm199_vm5, %vm200_vm4 }
 0x129   :  { %v195_v35 = vmul.f32 %v2171_v31, %v194_v33  ;;  %vm211_vm6 = vmor %vm209_vm2, %vm210_vm3 }
 0x12a   :  { %v205_v36 = vmul.f32 %v2173_v32, %v204_v34 }
 0x12b   :  { %v196_v37 = vmul.f32 0.5, %v195_v35 }
 0x12c   :  { %v206_v38 = vmul.f32 0.5, %v205_v36 }
 0x12d   :  { %v197_v39 = vsub.f32 1.5, %v196_v37 }
 0x12e   :  { %v207_v40 = vsub.f32 1.5, %v206_v38 }
 0x12f   :  { %v198_v41 = vmul.f32 %v2171_v31, %v197_v39 }
 0x130   :  { %v208_v43 = vmul.f32 %v2173_v32, %v207_v40 }
 0x131   :  { %v202_v44 = vsel %vm201_vm7, %v2171_v31, %v198_v41 }
 0x132   :  { %v213_v45 = vmul.f32 %v202_v44, %v179_v15  ;;  %v212_v47 = vsel %vm211_vm6, %v2173_v32, %v208_v43 }
 0x133   :  { %v214_v49 = vmul.f32 %v212_v47, %v180_v16 }
 0x134   :  { %v218_v48 = vmul.f32 %v2148_v42, %v213_v45 }
 0x135   :  { %v219_v51 = vmul.f32 %v2148_v42, %v214_v49 }
 0x136   :  { %v2621_v50 = vadd.f32 %v2149_v46, %v218_v48 }
 0x137   :  { %v2625_v52 = vadd.f32 %v2149_v46, %v219_v51 }
 0x138   :  { %2033 = vmatmul.msk.f32.vlgmr.msra.gmra.mxu0 %vm163_vm0, %v2621_v50 }
 0x140   :  { %2034 = vmatmul.msk.f32.gmra.mxu0 %vm163_vm0, %v2625_v52 }
 0x1b5   :  { %v256_v54 = vpop.f32.mrf.mxu0 }
 0x1b6   :  { %v2632_v55 = vadd.f32 %v2629_v53, %v256_v54 }
 0x1b8   :  { %330 = vrot.lane.b32.xlu0 %v2632_v55, %s2453_s4  ;;  %263 = vrot.lane.b32.xlu2 %v2632_v55, %s2454_s0 }
 0x1bd   :  { %v259_v63 = vpop.f32.mrf.mxu0 }
 0x1be   :  { %v2682_v35 = vadd.f32 %v2629_v53, %v259_v63 }
 0x1c0   :  { %304 = vrot.lane.b32.xlu0 %v2632_v55, %s2455_s21  ;;  %332 = vrot.lane.b32.xlu2 %v2632_v55, %s2456_s1 }
 0x1c8   :  { %399 = vrot.lane.b32.xlu0 %v2632_v55, %s2457_s23 }
 0x1d0   :  { %466 = vrot.lane.b32.xlu0 %v2632_v55, %s2458_s5 }
 0x1d8   :  { %464 = vrot.lane.b32.xlu0 %v2632_v55, %s3153_s24 }
 0x212   :  { %v264_v56 = vpop.permute.xlu2 %263 }
 0x213   :  { %2035 = vmatpush.xpose.msk.msrb.mxu0 %vm265_vm8, %v264_v56 }
 0x216   :  { %2036 = vmatmul.msk.f32.vlgmr.msrb.gmra.mxu0 %vm265_vm8, %v2632_v55 }
 0x21a   :  { %v333_v57 = vpop.permute.xlu2 %332 }
 0x21b   :  { %2038 = vmatpush.xpose.msk.msra.mxu3 %vm265_vm8, %v333_v57 }
 0x22a   :  { %v331_v58 = vpop.permute.xlu0 %330 }
 0x22b   :  { %2039 = vmatmul.msk.f32.vlgmr.msra.gmra.mxu3 %vm265_vm8, %v331_v58 }
 0x232   :  { %v305_v59 = vpop.permute.xlu0 %304 }
 0x233   :  { %325 = vmatpush.msra.mxu2 %v305_v59 }
 0x23a   :  { %v400_v60 = vpop.permute.xlu0 %399 }
 0x23b   :  { %2041 = vmatpush.xpose.msk.msra.mxu1 %vm265_vm8, %v400_v60 }
 0x242   :  { %v467_v31 = vpop.permute.xlu0 %466 }
 0x24a   :  { %v465_v34 = vpop.permute.xlu0 %464 }
 0x293   :  { %v287_v2 = vpop.f32.mrf.mxu0 }
 0x294   :  { %v290_v3 = vmul.f32 0.35355338, %v287_v2 }
 0x296   :  { %v292_v4 = vadd.f32 %v2660_v1, %v290_v3 }
 0x298   :  { %v293_v5 = vsel %vm265_vm8, %v292_v4, -inf }
 0x299   :  { %294 = vmax.xlane.f32.xlu1 %v293_v5 }
 0x2ae   :  { %v355_v6 = vpop.f32.mrf.mxu3 }
 0x2af   :  { %v358_v7 = vmul.f32 0.35355338, %v355_v6 }
 0x2b1   :  { %v359_v8 = vadd.f32 %v358_v7, %v2660_v1 }
 0x2b3   :  { %v360_v9 = vsel %vm265_vm8, %v359_v8, -inf }
 0x2b4   :  { %361 = vmax.xlane.f32.xlu2 %v360_v9 }
 0x2cc   :  { %397 = vrot.lane.b32.xlu2 %v2632_v55, %s2460_s14 }
 0x30c   :  { %v295_v11 = vpop.xlane.xlu1 %294 }
 0x30d   :  { %v296_v12 = vsub.f32 %v292_v4, %v295_v11 }
 0x30f   :  { %v297_v13 = vmul.f32 1.442695, %v296_v12 }
 0x311   :  { %2174 = vpow2.f32 %v297_v13 }
 0x317   :  { %v2175_v14 = vpop.eup %2174 }
 0x318   :  { %v299_v15 = vsel %vm265_vm8, %v2175_v14, 0.0 }
 0x319   :  { %300 = vadd.xlane.f32.xlu1 %v299_v15 }
 0x327   :  { %v362_v16 = vpop.xlane.xlu2 %361 }
 0x328   :  { %v363_v17 = vsub.f32 %v359_v8, %v362_v16  ;;  %v2720_v8 = vperm.slane %v2657_v0, 1 }
 0x32a   :  { %v364_v18 = vmul.f32 1.442695, %v363_v17 }
 0x32c   :  { %2176 = vpow2.f32 %v364_v18 }
 0x32f   :  { %v398_v19 = vpop.permute.xlu2 %397 }
 0x330   :  { %2042 = vmatmul.msk.f32.vlgmr.msra.gmra.mxu1 %vm265_vm8, %v398_v19 }
 0x332   :  { %v2177_v20 = vpop.eup %2176 }
 0x333   :  { %v366_v21 = vsel %vm265_vm8, %v2177_v20, 0.0 }
 0x334   :  { %367 = vadd.xlane.f32.xlu1 %v366_v21 }
 0x34d   :  { %371 = vrot.lane.b32.xlu1 %v2632_v55, %s2461_s30 }
 0x38c   :  { %v301_v22 = vpop.xlane.xlu1 %300 }
 0x38d   :  { %2178 = vrcp.f32 %v301_v22 }
 0x393   :  { %v2179_v23 = vpop.eup %2178 }
 0x394   :  { %v303_v24 = vmul.f32 %v2179_v23, %v2175_v14 }
 0x396   :  { %2037 = vmatmul.msk.f32.vlgmr.msra.gmra.mxu2 %vm265_vm8, %v303_v24 }
 0x3a7   :  { %v368_v29 = vpop.xlane.xlu1 %367 }
 0x3a8   :  { %2180 = vrcp.f32 %v368_v29  ;;  %v832_v29 = vld [vmem:[%s3137_s6 + $0x8] sm:$0xff] }
 0x3ad   :  { %v422_v25 = vpop.f32.mrf.mxu1 }
 0x3ae   :  { %v425_v26 = vmul.f32 0.35355338, %v422_v25  ;;  %v2181_v30 = vpop.eup %2180 }
 0x3af   :  { %v370_v33 = vmul.f32 %v2181_v30, %v2177_v20 }
 0x3b0   :  { %v426_v27 = vadd.f32 %v425_v26, %v2660_v1  ;;  %v834_v26 = vld [vmem:[%s3137_s6 + $0x18] sm:$0xff] }
 0x3b2   :  { %v427_v28 = vsel %vm265_vm8, %v426_v27, -inf }
 0x3b3   :  { %428 = vmax.xlane.f32.xlu1 %v427_v28 }
 0x3bf   :  { %v372_v32 = vpop.permute.xlu1 %371 }
 0x3c0   :  { %392 = vmatpush.msrb.mxu2 %v372_v32 }
 0x3c1   :  { %2040 = vmatmul.msk.f32.vlgmr.msrb.gmra.mxu2 %vm265_vm8, %v370_v33 }
 0x3c2   :  { %2044 = vmatpush.xpose.msk.msra.mxu2 %vm265_vm8, %v467_v31 }
 0x3c9   :  { %2045 = vmatmul.msk.f32.vlgmr.msra.gmra.mxu2 %vm265_vm8, %v465_v34 }
 0x3cc   :  { %505 = vrot.lane.b32.xlu1 %v2632_v55, %s2462_s2 }
 0x3d4   :  { %684 = vrot.lane.b32.xlu1 %v2682_v35, %s2457_s23 }
 0x419   :  { %v2687_v41 = vpop.f32.mrf.mxu2 }
 0x426   :  { %v429_v36 = vpop.xlane.xlu1 %428 }
 0x427   :  { %v430_v37 = vsub.f32 %v426_v27, %v429_v36  ;;  %v833_v27 = vld [vmem:[%s3137_s6 + $0x10] sm:$0xff] }
 0x429   :  { %v431_v38 = vmul.f32 1.442695, %v430_v37 }
 0x42b   :  { %2182 = vpow2.f32 %v431_v38 }
 0x431   :  { %v2183_v39 = vpop.eup %2182 }
 0x432   :  { %v433_v40 = vsel %vm265_vm8, %v2183_v39, 0.0 }
 0x433   :  { %434 = vadd.xlane.f32.xlu2 %v433_v40 }
 0x43e   :  { %v506_v42 = vpop.permute.xlu1 %505 }
 0x43f   :  { %526 = vmatpush.msrb.mxu1 %v506_v42 }
 0x444   :  { %v394_v43 = vpop.f32.mrf.mxu2 }
 0x446   :  { %v685_v60 = vpop.permute.xlu1 %684 }
 0x44b   :  { %549 = vrot.lane.b32.xlu2 %v2682_v35, %s2454_s0 }
 0x44c   :  { %v489_v44 = vpop.f32.mrf.mxu2 }
 0x44d   :  { %v492_v45 = vmul.f32 0.35355338, %v489_v44 }
 0x44f   :  { %v493_v46 = vadd.f32 %v492_v45, %v2660_v1 }
 0x451   :  { %v494_v47 = vsel %vm265_vm8, %v493_v46, -inf }
 0x452   :  { %495 = vmax.xlane.f32.xlu0 %v494_v47 }
 0x453   :  { %682 = vrot.lane.b32.xlu2 %v2682_v35, %s2460_s14 }
 0x466   :  { %438 = vrot.lane.b32.xlu0 %v2632_v55, %s3157_s25 }
 0x46e   :  { %617 = vrot.lane.b32.xlu0 %v2682_v35, %s2456_s1 }
 0x476   :  { %615 = vrot.lane.b32.xlu0 %v2682_v35, %s2453_s4 }
 0x47e   :  { %751 = vrot.lane.b32.xlu0 %v2682_v35, %s2458_s5 }
 0x486   :  { %532 = vrot.lane.b32.xlu0 %v394_v43, %s3155_s28  ;;  %v831_v43 = vld [vmem:[%s3137_s6] sm:$0xff] }
 0x4a6   :  { %v435_v53 = vpop.xlane.xlu2 %434 }
 0x4ae   :  { %v550_v59 = vpop.permute.xlu2 %549 }
 0x4b6   :  { %v683_v63 = vpop.permute.xlu2 %682 }
 0x4c5   :  { %v496_v48 = vpop.xlane.xlu0 %495 }
 0x4c6   :  { %v497_v49 = vsub.f32 %v493_v46, %v496_v48 }
 0x4c8   :  { %v498_v51 = vmul.f32 1.442695, %v497_v49 }
 0x4ca   :  { %2184 = vpow2.f32 %v498_v51 }
 0x4cb   :  { %2186 = vrcp.f32 %v435_v53 }
 0x4d0   :  { %v2185_v54 = vpop.eup %2184 }
 0x4d1   :  { %v500_v55 = vsel %vm265_vm8, %v2185_v54, 0.0  ;;  %v2187_v56 = vpop.eup %2186 }
 0x4d2   :  { %501 = vadd.xlane.f32.xlu1 %v500_v55  ;;  %v437_v58 = vmul.f32 %v2187_v56, %v2183_v39 }
 0x4d8   :  { %v439_v57 = vpop.permute.xlu0 %438 }
 0x4d9   :  { %459 = vmatpush.msrb.mxu3 %v439_v57 }
 0x4da   :  { %2043 = vmatmul.msk.f32.vlgmr.msrb.gmra.mxu3 %vm265_vm8, %v437_v58 }
 0x4db   :  { %2047 = vmatpush.xpose.msk.msra.mxu3 %vm265_vm8, %v550_v59 }
 0x4df   :  { %2053 = vmatpush.xpose.msk.msrb.mxu3 %vm265_vm8, %v685_v60 }
 0x4e0   :  { %v618_v61 = vpop.permute.xlu0 %617 }
 0x4e1   :  { %2050 = vmatpush.xpose.msk.msrb.mxu2 %vm265_vm8, %v618_v61 }
 0x4e2   :  { %2048 = vmatmul.msk.f32.vlgmr.msra.gmra.mxu3 %vm265_vm8, %v2682_v35 }
 0x4e3   :  { %857 = vmatpush.msra.mxu3 %v834_v26  ;;  %v929_v26 = vld [vmem:[%s3141_s10 + $0x18] sm:$0xff] }
 0x4e5   :  { %858 = vmatpush.msra.mxu3 %v833_v27  ;;  %v928_v27 = vld [vmem:[%s3141_s10 + $0x10] sm:$0xff] }
 0x4e7   :  { %859 = vmatpush.msra.mxu3 %v832_v29  ;;  %v926_v29 = vld [vmem:[%s3141_s10] sm:$0xff] }
 0x4e8   :  { %v616_v62 = vpop.permute.xlu0 %615 }
 0x4e9   :  { %2051 = vmatmul.msk.f32.vlgmr.msrb.gmra.mxu2 %vm265_vm8, %v616_v62  ;;  %860 = vmatpush.msra.mxu3 %v831_v43 }
 0x4ea   :  { %2054 = vmatmul.msk.f32.vlgmr.msrb.gmra.mxu3 %vm265_vm8, %v683_v63  ;;  %v2764_v63 = vld [vmem:[%s3138_s7] ss:$0 sm:$0xff] }
 0x4eb   :  { %749 = vrot.lane.b32.xlu1 %v2682_v35, %s3153_s24 }
 0x4f0   :  { %v752_v2 = vpop.permute.xlu0 %751 }
 0x4f1   :  { %2056 = vmatpush.xpose.msk.msra.mxu2 %vm265_vm8, %v752_v2 }
 0x4f8   :  { %v533_v0 = vpop.permute.xlu0 %532 }
 0x4f9   :  { %v543_v44 = vsel %vm265_vm8, %v2687_v41, %v533_v0 }
 0x545   :  { %v502_v3 = vpop.xlane.xlu1 %501 }
 0x546   :  { %2188 = vrcp.f32 %v502_v3 }
 0x54c   :  { %v2189_v4 = vpop.eup %2188 }
 0x54d   :  { %v504_v5 = vmul.f32 %v2189_v4, %v2185_v54 }
 0x54f   :  { %2046 = vmatmul.msk.f32.vlgmr.msrb.gmra.mxu1 %vm265_vm8, %v504_v5 }
 0x55d   :  { %v461_v6 = vpop.f32.mrf.mxu3  ;;  %v750_v7 = vpop.permute.xlu1 %749 }
 0x55e   :  { %536 = vrot.lane.b32.xlu2 %v461_v6, %s3159_s29  ;;  %2057 = vmatmul.msk.f32.vlgmr.msra.gmra.mxu2 %vm265_vm8, %v750_v7 }
 0x565   :  { %v572_v9 = vpop.f32.mrf.mxu3 }
 0x566   :  { %v575_v11 = vmul.f32 0.35355338, %v572_v9 }
 0x568   :  { %v577_v12 = vadd.f32 %v2720_v8, %v575_v11 }
 0x56a   :  { %v578_v13 = vsel %vm265_vm8, %v577_v12, -inf }
 0x56b   :  { %579 = vmax.xlane.f32.xlu0 %v578_v13 }
 0x56c   :  { %v640_v14 = vpop.f32.mrf.mxu2 }
 0x56d   :  { %v643_v15 = vmul.f32 0.35355338, %v640_v14  ;;  %v707_v31 = vpop.f32.mrf.mxu3 }
 0x56e   :  { %v710_v32 = vmul.f32 0.35355338, %v707_v31 }
 0x56f   :  { %v644_v16 = vadd.f32 %v643_v15, %v2720_v8 }
 0x570   :  { %v711_v34 = vadd.f32 %v710_v32, %v2720_v8 }
 0x571   :  { %v645_v17 = vsel %vm265_vm8, %v644_v16, -inf }
 0x572   :  { %v712_v36 = vsel %vm265_vm8, %v711_v34, -inf }
 0x587   :  { %646 = vmax.xlane.f32.xlu2 %v645_v17 }
 0x5b8   :  { %v537_v33 = vpop.permute.xlu2 %536 }
 0x5b9   :  { %v545_v45 = vsel %vm544_vm9, %v543_v44, %v537_v33  ;;  %v2795_v44 = vld [vmem:[%s3140_s9] ss:$0 sm:$0xff] }
 0x5cc   :  { %v528_v18 = vpop.f32.mrf.mxu1 }
 0x5cd   :  { %540 = vrot.lane.b32.xlu1 %v528_v18, %s3161_s3 }
 0x5de   :  { %v580_v19 = vpop.xlane.xlu0 %579 }
 0x5df   :  { %v581_v20 = vsub.f32 %v577_v12, %v580_v19 }
 0x5e1   :  { %v582_v21 = vmul.f32 1.442695, %v581_v20  ;;  %v774_v22 = vpop.f32.mrf.mxu2 }
 0x5e2   :  { %v777_v23 = vmul.f32 0.35355338, %v774_v22 }
 0x5e3   :  { %2190 = vpow2.f32 %v582_v21 }
 0x5e4   :  { %v778_v24 = vadd.f32 %v777_v23, %v2720_v8 }
 0x5e6   :  { %v779_v25 = vsel %vm265_vm8, %v778_v24, -inf }
 0x5e7   :  { %780 = vmax.xlane.f32.xlu2 %v779_v25 }
 0x5e9   :  { %v2191_v28 = vpop.eup %2190 }
 0x5ea   :  { %v584_v30 = vsel %vm265_vm8, %v2191_v28, 0.0 }
 0x5eb   :  { %585 = vadd.xlane.f32.xlu0 %v584_v30 }
 0x5f7   :  { %713 = vmax.xlane.f32.xlu1 %v712_v36 }
 0x5fa   :  { %v647_v37 = vpop.xlane.xlu2 %646 }
 0x5fb   :  { %v648_v38 = vsub.f32 %v644_v16, %v647_v37 }
 0x5fd   :  { %v649_v39 = vmul.f32 1.442695, %v648_v38 }
 0x5ff   :  { %2192 = vpow2.f32 %v649_v39  ;;  %589 = vrot.lane.b32.xlu0 %v2682_v35, %s2455_s21 }
 0x605   :  { %v2193_v40 = vpop.eup %2192 }
 0x606   :  { %v651_v42 = vsel %vm265_vm8, %v2193_v40, 0.0 }
 0x607   :  { %790 = vrot.lane.b32.xlu0 %v2682_v35, %s2462_s2  ;;  %652 = vadd.xlane.f32.xlu1 %v651_v42 }
 0x63f   :  { %v541_v46 = vpop.permute.xlu1 %540 }
 0x640   :  { %v547_v47 = vsel %vm546_vm10, %v545_v45, %v541_v46 }
 0x641   :  { %2059 = vmatmul.msk.f32.vlgmr.msra.gmra.mxu3 %vm163_vm0, %v547_v47 }
 0x65a   :  { %v781_v48 = vpop.xlane.xlu2 %780 }
 0x65b   :  { %v782_v49 = vsub.f32 %v778_v24, %v781_v48 }
 0x65d   :  { %v783_v51 = vmul.f32 1.442695, %v782_v49 }
 0x65e   :  { %v586_v54 = vpop.xlane.xlu0 %585 }
 0x65f   :  { %2194 = vpow2.f32 %v783_v51 }
 0x660   :  { %2196 = vrcp.f32 %v586_v54 }
 0x665   :  { %v2195_v53 = vpop.eup %2194 }
 0x666   :  { %v785_v55 = vsel %vm265_vm8, %v2195_v53, 0.0  ;;  %v2197_v58 = vpop.eup %2196 }
 0x667   :  { %786 = vadd.xlane.f32.xlu1 %v785_v55  ;;  %v588_v59 = vmul.f32 %v2197_v58, %v2191_v28  ;;  %v927_v28 = vld [vmem:[%s3141_s10 + $0x8] sm:$0xff]  ;;  %v988_v55 = vld [vmem:[%s3143_s12 + $0x38] sm:$0xff] }
 0x668   :  { %1008 = vmatpush.msrb.mxu2 %v988_v55  ;;  %v984_v58 = vld [vmem:[%s3143_s12 + $0x18] sm:$0xff] }
 0x66a   :  { %v714_v56 = vpop.xlane.xlu1 %713 }
 0x66b   :  { %v715_v57 = vsub.f32 %v711_v34, %v714_v56  ;;  %v987_v56 = vld [vmem:[%s3143_s12 + $0x30] sm:$0xff] }
 0x66c   :  { %1009 = vmatpush.msrb.mxu2 %v987_v56 }
 0x66d   :  { %v716_v41 = vmul.f32 1.442695, %v715_v57  ;;  %v986_v57 = vld [vmem:[%s3143_s12 + $0x28] sm:$0xff] }
 0x66e   :  { %1010 = vmatpush.msrb.mxu2 %v986_v57 }
 0x66f   :  { %2198 = vpow2.f32 %v716_v41  ;;  %v985_v41 = vld [vmem:[%s3143_s12 + $0x20] sm:$0xff] }
 0x670   :  { %1011 = vmatpush.msrb.mxu2 %v985_v41 }
 0x671   :  { %v590_v60 = vpop.permute.xlu0 %589 }
 0x672   :  { %610 = vmatpush.msra.mxu0 %v590_v60  ;;  %1012 = vmatpush.msrb.mxu2 %v984_v58  ;;  %v982_v60 = vld [vmem:[%s3143_s12 + $0x8] sm:$0xff]  ;;  %v2866_v58 = vld [vmem:[#allocation11] ss:$0 sm:$0xff] }
 0x673   :  { %2049 = vmatmul.msk.f32.vlgmr.msra.gmra.mxu0 %vm265_vm8, %v588_v59  ;;  %v983_v59 = vld [vmem:[%s3143_s12 + $0x10] sm:$0xff] }
 0x674   :  { %1013 = vmatpush.msrb.mxu2 %v983_v59 }
 0x675   :  { %v2199_v61 = vpop.eup %2198 }
 0x676   :  { %v718_v62 = vsel %vm265_vm8, %v2199_v61, 0.0  ;;  %1014 = vmatpush.msrb.mxu2 %v982_v60 }
 0x677   :  { %719 = vadd.xlane.f32.xlu2 %v718_v62  ;;  %v2831_v62 = vld [vmem:[%s3142_s11] ss:$0 sm:$0xff] }
 0x679   :  { %v791_v16 = vpop.permute.xlu0 %790 }
 0x67a   :  { %v653_v6 = vpop.xlane.xlu1 %652 }
 0x67b   :  { %2200 = vrcp.f32 %v653_v6 }
 0x680   :  { %723 = vrot.lane.b32.xlu1 %v2682_v35, %s3157_s25  ;;  %s3175_s25 = smov 104  }
 0x681   :  { %v2201_v11 = vpop.eup %2200 }
 0x682   :  { %v655_v12 = vmul.f32 %v2201_v11, %v2193_v40  ;;  %v2790_v40 = vld [vmem:[#allocation10] ss:$0 sm:$0xff] }
 0x68f   :  { %656 = vrot.lane.b32.xlu2 %v2682_v35, %s2461_s30 }
 0x6c4   :  { %v862_v2 = vpop.f32.mrf.mxu3 }
 0x6c5   :  { %v863_v3 = vadd.f32 %v2764_v63, %v862_v2 }
 0x6c7   :  { %v868_v4 = vadd.f32 %v863_v3, %v2621_v50 }
 0x6c9   :  { %v872_v5 = vsel %vm163_vm0, %v868_v4, 0.0 }
 0x6ca   :  { %873 = vadd.xlane.f32.xlu0 %v872_v5 }
 0x6da   :  { %v787_v7 = vpop.xlane.xlu1 %786 }
 0x6ea   :  { %v720_v9 = vpop.xlane.xlu2 %719 }
 0x6eb   :  { %2202 = vrcp.f32 %v720_v9 }
 0x6ec   :  { %2204 = vrcp.f32 %v787_v7 }
 0x6f0   :  { %v612_v22 = vpop.f32.mrf.mxu0 }
 0x6f1   :  { %v2203_v35 = vpop.eup %2202 }
 0x6f2   :  { %v722_v13 = vmul.f32 %v2203_v35, %v2199_v61  ;;  %v657_v14 = vpop.permute.xlu2 %656  ;;  %v724_v15 = vpop.permute.xlu1 %723  ;;  %v981_v61 = vld [vmem:[%s3143_s12] sm:$0xff] }
 0x6f3   :  { %677 = vmatpush.msra.mxu1 %v657_v14  ;;  %744 = vmatpush.msrb.mxu0 %v724_v15  ;;  %v2205_v50 = vpop.eup %2204 }
 0x6f4   :  { %2052 = vmatmul.msk.f32.vlgmr.msra.gmra.mxu1 %vm265_vm8, %v655_v12  ;;  %2055 = vmatmul.msk.f32.vlgmr.msrb.gmra.mxu0 %vm265_vm8, %v722_v13  ;;  %v789_v17 = vmul.f32 %v2205_v50, %v2195_v53 }
 0x6f5   :  { %811 = vmatpush.msrb.mxu1 %v791_v16  ;;  %952 = vmatpush.msra.mxu0 %v929_v26 }
 0x6f6   :  { %1015 = vmatpush.msrb.mxu2 %v981_v61  ;;  %v2871_v61 = vld [vmem:[%s3146_s15] ss:$0 sm:$0xff] }
 0x6f7   :  { %953 = vmatpush.msra.mxu0 %v928_v27 }
 0x6f9   :  { %954 = vmatpush.msra.mxu0 %v927_v28 }
 0x6fb   :  { %955 = vmatpush.msra.mxu0 %v926_v29 }
 0x6fc   :  { %2058 = vmatmul.msk.f32.vlgmr.msrb.gmra.mxu1 %vm265_vm8, %v789_v17  ;;  %v2841_v17 = vld [vmem:[%s3144_s13] ss:$0 sm:$0xff] }
 0x73d   :  { %v874_v18 = vpop.xlane.xlu0 %873 }
 0x73e   :  { %v878_v0 = vmul.f32 %v874_v18, %v2601_v10 }
 0x740   :  { %v880_v19 = vsub.f32 %v868_v4, %v878_v0 }
 0x742   :  { %v882_v20 = vmul.f32 %v880_v19, %v880_v19 }
 0x744   :  { %v884_v21 = vsel %vm163_vm0, %v882_v20, 0.0 }
 0x745   :  { %885 = vadd.xlane.f32.xlu2 %v884_v21 }
 0x771   :  { %v679_v23 = vpop.f32.mrf.mxu1  ;;  %v746_v24 = vpop.f32.mrf.mxu0 }
 0x772   :  { %817 = vrot.lane.b32.xlu1 %v679_v23, %s3155_s28  ;;  %s3181_s28 = sld [smem:[#allocation25_spill]] }
 0x779   :  { %v813_v25 = vpop.f32.mrf.mxu1 }
 0x77a   :  { %821 = vrot.lane.b32.xlu1 %v746_v24, %s3159_s29 }
 0x782   :  { %825 = vrot.lane.b32.xlu1 %v813_v25, %s3161_s3 }
 0x7b8   :  { %v886_v30 = vpop.xlane.xlu2 %885 }
 0x7b9   :  { %v890_v31 = vmul.f32 %v886_v30, %v2601_v10 }
 0x7bb   :  { %v892_v32 = vadd.f32 1e-12, %v890_v31 }
 0x7bd   :  { %2206 = vrsqrt.f32 %v892_v32  ;;  %vm900_vm12 = vweird.f32 %v892_v32 }
 0x7c3   :  { %v2207_v33 = vpop.eup %2206 }
 0x7c4   :  { %v895_v34 = vmul.f32 %v2207_v33, %v892_v32  ;;  %vm901_vm11 = vweird.f32 %v2207_v33 }
 0x7c5   :  { %vm902_vm13 = vmor %vm900_vm12, %vm901_vm11 }
 0x7c6   :  { %v896_v36 = vmul.f32 %v2207_v33, %v895_v34 }
 0x7c8   :  { %v897_v37 = vmul.f32 0.5, %v896_v36 }
 0x7ca   :  { %v898_v38 = vsub.f32 1.5, %v897_v37 }
 0x7cc   :  { %v899_v39 = vmul.f32 %v2207_v33, %v898_v38 }
 0x7ce   :  { %v903_v42 = vsel %vm902_vm13, %v2207_v33, %v899_v39 }
 0x7cf   :  { %v914_v43 = vmul.f32 %v903_v42, %v880_v19 }
 0x7d1   :  { %v919_v45 = vmul.f32 %v2790_v40, %v914_v43 }
 0x7d3   :  { %v924_v46 = vadd.f32 %v2795_v44, %v919_v45 }
 0x7d5   :  { %2061 = vmatmul.msk.f32.vlgmr.msra.gmra.mxu0 %vm163_vm0, %v924_v46 }
 0x7e4   :  { %v818_v47 = vpop.permute.xlu1 %817 }
 0x7e5   :  { %v828_v49 = vsel %vm265_vm8, %v612_v22, %v818_v47  ;;  %v2067_v47 = vld [vmem:[%s3173_s19 + $0x30] sm:$0xff] }
 0x7ec   :  { %v822_v48 = vpop.permute.xlu1 %821 }
 0x7ed   :  { %v829_v51 = vsel %vm544_vm9, %v828_v49, %v822_v48  ;;  %v2066_v48 = vld [vmem:[%s3173_s19 + $0x28] sm:$0xff] }
 0x7f4   :  { %v826_v53 = vpop.permute.xlu1 %825 }
 0x7f5   :  { %v830_v54 = vsel %vm546_vm10, %v829_v51, %v826_v53 }
 0x7f6   :  { %2060 = vmatmul.msk.f32.gmra.mxu3 %vm163_vm0, %v830_v54 }
 0x852   :  { %v957_v2 = vpop.f32.mrf.mxu0 }
 0x853   :  { %v958_v3 = vadd.f32 %v2831_v62, %v957_v2 }
 0x855   :  { %v965_v4 = vmul.f32 0.044715, %v958_v3  ;;  %v963_v35 = vmul.f32 0.5, %v958_v3 }
 0x857   :  { %v967_v5 = vmul.f32 %v965_v4, %v958_v3 }
 0x859   :  { %v969_v6 = vmul.f32 %v967_v5, %v958_v3 }
 0x85b   :  { %v971_v7 = vadd.f32 %v969_v6, %v958_v3 }
 0x85d   :  { %v973_v9 = vmul.f32 0.7978846, %v971_v7 }
 0x85f   :  { %2208 = vtanh.f32 %v973_v9 }
 0x865   :  { %v2209_v11 = vpop.eup %2208 }
 0x866   :  { %v977_v12 = vadd.f32 1.0, %v2209_v11 }
 0x868   :  { %v979_v13 = vmul.f32 %v977_v12, %v963_v35 }
 0x86a   :  { %2063 = vmatmul.msk.f32.vlgmr.msrb.gmra.mxu2 %vm993_vm14, %v979_v13 }
 0x879   :  { %v865_v14 = vpop.f32.mrf.mxu3 }
 0x87a   :  { %v866_v15 = vadd.f32 %v2764_v63, %v865_v14 }
 0x87c   :  { %v869_v16 = vadd.f32 %v866_v15, %v2625_v52 }
 0x87e   :  { %v875_v50 = vsel %vm163_vm0, %v869_v16, 0.0 }
 0x87f   :  { %876 = vadd.xlane.f32.xlu1 %v875_v50 }
 0x8ed   :  { %v1017_v18 = vpop.f32.mrf.mxu2 }
 0x8ee   :  { %v1018_v0 = vadd.f32 %v2841_v17, %v1017_v18 }
 0x8f0   :  { %v1023_v19 = vadd.f32 %v1018_v0, %v924_v46  ;;  %v2068_v46 = vld [vmem:[%s3173_s19 + $0x38] sm:$0xff] }
 0x8f1   :  { %1109 = vmatpush.msra.mxu1 %v2068_v46 }
 0x8f2   :  { %v877_v20 = vpop.xlane.xlu1 %876  ;;  %v1027_v21 = vsel %vm163_vm0, %v1023_v19, 0.0 }
 0x8f3   :  { %v879_v22 = vmul.f32 %v877_v20, %v2601_v10  ;;  %1028 = vadd.xlane.f32.xlu2 %v1027_v21  ;;  %1110 = vmatpush.msra.mxu1 %v2067_v47 }
 0x8f5   :  { %v881_v63 = vsub.f32 %v869_v16, %v879_v22  ;;  %1111 = vmatpush.msra.mxu1 %v2066_v48  ;;  %v2158_v16 = vld [vmem:[#allocation8 + $0x1] ss:$0 sm:$0xff] }
 0x8f7   :  { %v883_v52 = vmul.f32 %v881_v63, %v881_v63 }
 0x8f9   :  { %v887_v23 = vsel %vm163_vm0, %v883_v52, 0.0 }
 0x8fa   :  { %888 = vadd.xlane.f32.xlu0 %v887_v23 }
 0x966   :  { %v1029_v24 = vpop.xlane.xlu2 %1028 }
 0x967   :  { %v1033_v25 = vmul.f32 %v1029_v24, %v2601_v10 }
 0x969   :  { %v1035_v26 = vsub.f32 %v1023_v19, %v1033_v25 }
 0x96b   :  { %v1037_v27 = vmul.f32 %v1035_v26, %v1035_v26 }
 0x96d   :  { %v889_v28 = vpop.xlane.xlu0 %888  ;;  %v1039_v29 = vsel %vm163_vm0, %v1037_v27, 0.0 }
 0x96e   :  { %v891_v30 = vmul.f32 %v889_v28, %v2601_v10  ;;  %1040 = vadd.xlane.f32.xlu0 %v1039_v29 }
 0x970   :  { %v893_v31 = vadd.f32 1e-12, %v891_v30 }
 0x972   :  { %2210 = vrsqrt.f32 %v893_v31  ;;  %vm910_vm1 = vweird.f32 %v893_v31 }
 0x978   :  { %v2211_v32 = vpop.eup %2210 }
 0x979   :  { %v905_v33 = vmul.f32 %v2211_v32, %v893_v31  ;;  %vm911_vm15 = vweird.f32 %v2211_v32 }
 0x97a   :  { %vm912_vm2 = vmor %vm910_vm1, %vm911_vm15 }
 0x97b   :  { %v906_v34 = vmul.f32 %v2211_v32, %v905_v33 }
 0x97d   :  { %v907_v36 = vmul.f32 0.5, %v906_v34 }
 0x97f   :  { %v908_v37 = vsub.f32 1.5, %v907_v36 }
 0x981   :  { %v909_v38 = vmul.f32 %v2211_v32, %v908_v37 }
 0x983   :  { %v913_v39 = vsel %vm912_vm2, %v2211_v32, %v909_v38 }
 0x984   :  { %v915_v42 = vmul.f32 %v913_v39, %v881_v63 }
 0x986   :  { %v920_v43 = vmul.f32 %v2790_v40, %v915_v42  ;;  %v2065_v40 = vld [vmem:[%s3173_s19 + $0x20] sm:$0xff] }
 0x987   :  { %1112 = vmatpush.msra.mxu1 %v2065_v40 }
 0x988   :  { %v925_v45 = vadd.f32 %v2795_v44, %v920_v43 }
 0x98a   :  { %2062 = vmatmul.msk.f32.gmra.mxu0 %vm163_vm0, %v925_v45 }
 0x9e1   :  { %v1041_v44 = vpop.xlane.xlu0 %1040 }
 0x9e2   :  { %v1045_v49 = vmul.f32 %v1041_v44, %v2601_v10 }
 0x9e4   :  { %v1047_v51 = vadd.f32 1e-12, %v1045_v49 }
 0x9e6   :  { %2212 = vrsqrt.f32 %v1047_v51  ;;  %vm1055_vm4 = vweird.f32 %v1047_v51 }
 0x9ec   :  { %v2213_v53 = vpop.eup %2212 }
 0x9ed   :  { %v1050_v54 = vmul.f32 %v2213_v53, %v1047_v51  ;;  %vm1056_vm3 = vweird.f32 %v2213_v53 }
 0x9ee   :  { %vm1057_vm5 = vmor %vm1055_vm4, %vm1056_vm3 }
 0x9ef   :  { %v1051_v55 = vmul.f32 %v2213_v53, %v1050_v54 }
 0x9f1   :  { %v1052_v56 = vmul.f32 0.5, %v1051_v55 }
 0x9f3   :  { %v1053_v57 = vsub.f32 1.5, %v1052_v56 }
 0x9f5   :  { %v1054_v41 = vmul.f32 %v2213_v53, %v1053_v57 }
 0x9f7   :  { %v1058_v59 = vsel %vm1057_vm5, %v2213_v53, %v1054_v41 }
 0x9f8   :  { %v1069_v60 = vmul.f32 %v1058_v59, %v1035_v26 }
 0x9fa   :  { %v1074_v2 = vmul.f32 %v2866_v58, %v1069_v60 }
 0x9fc   :  { %v2875_v3 = vadd.f32 %v2871_v61, %v1074_v2 }
 0x9fe   :  { %2069 = vmatmul.msk.f32.vlgmr.msra.gmra.mxu1 %vm163_vm0, %v2875_v3 }
 0xa07   :  { %v960_v4 = vpop.f32.mrf.mxu0 }
 0xa08   :  { %v961_v5 = vadd.f32 %v2831_v62, %v960_v4 }
 0xa0a   :  { %v966_v6 = vmul.f32 0.044715, %v961_v5  ;;  %v964_v13 = vmul.f32 0.5, %v961_v5 }
 0xa0c   :  { %v968_v7 = vmul.f32 %v966_v6, %v961_v5 }
 0xa0e   :  { %v970_v9 = vmul.f32 %v968_v7, %v961_v5 }
 0xa10   :  { %v972_v11 = vadd.f32 %v970_v9, %v961_v5 }
 0xa12   :  { %v974_v35 = vmul.f32 0.7978846, %v972_v11 }
 0xa14   :  { %2214 = vtanh.f32 %v974_v35 }
 0xa1a   :  { %v2215_v12 = vpop.eup %2214 }
 0xa1b   :  { %v978_v14 = vadd.f32 1.0, %v2215_v12 }
 0xa1d   :  { %v980_v15 = vmul.f32 %v978_v14, %v964_v13 }
 0xa1f   :  { %2064 = vmatmul.msk.f32.gmra.mxu2 %vm993_vm14, %v980_v15 }
 0xa7b   :  { %v1114_v50 = vpop.f32.mrf.mxu1 }
 0xa7c   :  { %v2881_v18 = vadd.f32 %v2158_v16, %v1114_v50 }
 0xa7e   :  { %1121 = vrot.lane.b32.xlu2 %v2881_v18, %s2454_s0 }
 0xa86   :  { %1188 = vrot.lane.b32.xlu2 %v2881_v18, %s2456_s1 }
 0xa8e   :  { %1255 = vrot.lane.b32.xlu2 %v2881_v18, %s2457_s23 }
 0xa96   :  { %1322 = vrot.lane.b32.xlu2 %v2881_v18, %s2458_s5 }
 0xa9e   :  { %1253 = vrot.lane.b32.xlu2 %v2881_v18, %s2460_s14 }
 0xaa2   :  { %v1020_v62 = vpop.f32.mrf.mxu2 }
 0xaa3   :  { %v1021_v0 = vadd.f32 %v2841_v17, %v1020_v62 }
 0xaa5   :  { %v1024_v19 = vadd.f32 %v1021_v0, %v925_v45 }
 0xaa7   :  { %v1030_v20 = vsel %vm163_vm0, %v1024_v19, 0.0 }
 0xaa8   :  { %1031 = vadd.xlane.f32.xlu0 %v1030_v20 }
 0xad8   :  { %v1122_v21 = vpop.permute.xlu2 %1121 }
 0xad9   :  { %2071 = vmatpush.xpose.msk.msrb.mxu3 %vm265_vm8, %v1122_v21 }
 0xadc   :  { %2072 = vmatmul.msk.f32.vlgmr.msrb.gmra.mxu3 %vm265_vm8, %v2881_v18 }
 0xae0   :  { %v1189_v22 = vpop.permute.xlu2 %1188 }
 0xae1   :  { %2074 = vmatpush.xpose.msk.msrb.mxu1 %vm265_vm8, %v1189_v22 }
 0xae8   :  { %v1256_v63 = vpop.permute.xlu2 %1255 }
 0xaf0   :  { %v1323_v52 = vpop.permute.xlu2 %1322 }
 0xaf1   :  { %2080 = vmatpush.xpose.msk.msra.mxu1 %vm265_vm8, %v1323_v52 }
 0xaf8   :  { %v1254_v6 = vpop.permute.xlu2 %1253 }
 0xb1b   :  { %v1032_v23 = vpop.xlane.xlu0 %1031 }
 0xb1c   :  { %v1034_v17 = vmul.f32 %v1032_v23, %v2601_v10 }
 0xb1e   :  { %v1036_v24 = vsub.f32 %v1024_v19, %v1034_v17 }
 0xb20   :  { %v1038_v25 = vmul.f32 %v1036_v24, %v1036_v24 }
 0xb22   :  { %v1042_v26 = vsel %vm163_vm0, %v1038_v25, 0.0 }
 0xb23   :  { %1043 = vadd.xlane.f32.xlu0 %v1042_v26 }
 0xb37   :  { %1186 = vrot.lane.b32.xlu0 %v2881_v18, %s2453_s4 }
 0xb3f   :  { %1320 = vrot.lane.b32.xlu0 %v2881_v18, %s3175_s25 }
 0xb5f   :  { %v1144_v27 = vpop.f32.mrf.mxu3 }
 0xb60   :  { %v1147_v28 = vmul.f32 0.35355338, %v1144_v27 }
 0xb62   :  { %v1148_v29 = vadd.f32 %v1147_v28, %v2660_v1 }
 0xb64   :  { %v1149_v30 = vsel %vm265_vm8, %v1148_v29, -inf }
 0xb65   :  { %1150 = vmax.xlane.f32.xlu1 %v1149_v30 }
 0xb7e   :  { %1160 = vrot.lane.b32.xlu1 %v2881_v18, %s2455_s21 }
 0xb96   :  { %v1044_v31 = vpop.xlane.xlu0 %1043 }
 0xb97   :  { %v1046_v32 = vmul.f32 %v1044_v31, %v2601_v10 }
 0xb99   :  { %v1048_v33 = vadd.f32 1e-12, %v1046_v32 }
 0xb9b   :  { %2216 = vrsqrt.f32 %v1048_v33  ;;  %vm1065_vm7 = vweird.f32 %v1048_v33 }
 0xba1   :  { %v2217_v34 = vpop.eup %2216 }
 0xba2   :  { %v1060_v36 = vmul.f32 %v2217_v34, %v1048_v33  ;;  %vm1066_vm6 = vweird.f32 %v2217_v34 }
 0xba3   :  { %vm1067_vm11 = vmor %vm1065_vm7, %vm1066_vm6  ;;  %vm1946_vm6 = vcmask 1040384   ;;  %vm2011_vm7 = vcmask 9216  }
 0xba4   :  { %v1061_v37 = vmul.f32 %v2217_v34, %v1060_v36 }
 0xba6   :  { %v1062_v38 = vmul.f32 0.5, %v1061_v37 }
 0xba8   :  { %v1063_v39 = vsub.f32 1.5, %v1062_v38 }
 0xba9   :  { %v1187_v48 = vpop.permute.xlu0 %1186 }
 0xbaa   :  { %v1064_v42 = vmul.f32 %v2217_v34, %v1063_v39 }
 0xbac   :  { %v1068_v43 = vsel %vm1067_vm11, %v2217_v34, %v1064_v42 }
 0xbad   :  { %v1070_v45 = vmul.f32 %v1068_v43, %v1036_v24 }
 0xbaf   :  { %v1075_v46 = vmul.f32 %v2866_v58, %v1070_v45 }
 0xbb1   :  { %v2913_v47 = vadd.f32 %v2871_v61, %v1075_v46  ;;  %v1321_v40 = vpop.permute.xlu0 %1320 }
 0xbb3   :  { %2070 = vmatmul.msk.f32.gmra.mxu1 %vm163_vm0, %v2913_v47 }
 0xbbb   :  { %2075 = vmatmul.msk.f32.vlgmr.msrb.gmra.mxu1 %vm265_vm8, %v1187_v48 }
 0xbc3   :  { %2081 = vmatmul.msk.f32.vlgmr.msra.gmra.mxu1 %vm265_vm8, %v1321_v40 }
 0xbd8   :  { %v1151_v44 = vpop.xlane.xlu1 %1150 }
 0xbd9   :  { %v1152_v54 = vsub.f32 %v1148_v29, %v1151_v44 }
 0xbdb   :  { %v1153_v55 = vmul.f32 1.442695, %v1152_v54 }
 0xbdd   :  { %2218 = vpow2.f32 %v1153_v55 }
 0xbe3   :  { %v2219_v57 = vpop.eup %2218 }
 0xbe4   :  { %v1155_v58 = vsel %vm265_vm8, %v2219_v57, 0.0 }
 0xbf0   :  { %v1161_v49 = vpop.permute.xlu1 %1160 }
 0xbf1   :  { %1181 = vmatpush.msrb.mxu0 %v1161_v49 }
 0xbf3   :  { %2077 = vmatpush.xpose.msk.msra.mxu0 %vm265_vm8, %v1256_v63 }
 0xc30   :  { %v1117_v51 = vpop.f32.mrf.mxu1 }
 0xc31   :  { %v2920_v53 = vadd.f32 %v2158_v16, %v1117_v51 }
 0xc33   :  { %1468 = vrot.lane.b32.xlu0 %v2920_v53, %s2453_s4  ;;  %1470 = vrot.lane.b32.xlu2 %v2920_v53, %s2456_s1  ;;  %s3176_s4 = smov 48  }
 0xc34   :  { %1403 = vrot.lane.b32.xlu1 %v2920_v53, %s2454_s0  ;;  %s3177_s0 = smov 8  }
 0xc38   :  { %v1211_v56 = vpop.f32.mrf.mxu1 }
 0xc39   :  { %v1214_v41 = vmul.f32 0.35355338, %v1211_v56 }
 0xc3b   :  { %1604 = vrot.lane.b32.xlu2 %v2920_v53, %s2458_s5  ;;  %v1215_v59 = vadd.f32 %v1214_v41, %v2660_v1 }
 0xc3c   :  { %1537 = vrot.lane.b32.xlu1 %v2920_v53, %s2457_s23 }
 0xc3d   :  { %v1216_v61 = vsel %vm265_vm8, %v1215_v59, -inf }
 0xc40   :  { %v1345_v60 = vpop.f32.mrf.mxu1 }
 0xc41   :  { %v1348_v2 = vmul.f32 0.35355338, %v1345_v60 }
 0xc43   :  { %v1349_v4 = vadd.f32 %v1348_v2, %v2660_v1 }
 0xc44   :  { %1602 = vrot.lane.b32.xlu1 %v2920_v53, %s3175_s25 }
 0xc45   :  { %v1350_v5 = vsel %vm265_vm8, %v1349_v4, -inf }
 0xc5d   :  { %1156 = vadd.xlane.f32.xlu0 %v1155_v58 }
 0xc64   :  { %1217 = vmax.xlane.f32.xlu2 %v1216_v61 }
 0xc6e   :  { %1351 = vmax.xlane.f32.xlu1 %v1350_v5 }
 0xc71   :  { %1535 = vrot.lane.b32.xlu0 %v2920_v53, %s2460_s14 }
 0xc8d   :  { %v1471_v7 = vpop.permute.xlu2 %1470 }
 0xc8e   :  { %2086 = vmatpush.xpose.msk.msrb.mxu1 %vm265_vm8, %v1471_v7 }
 0xc95   :  { %v1605_v9 = vpop.permute.xlu2 %1604 }
 0xc96   :  { %2092 = vmatpush.xpose.msk.msra.mxu1 %vm265_vm8, %v1605_v9 }
 0xca5   :  { %v1469_v11 = vpop.permute.xlu0 %1468 }
 0xca6   :  { %v1404_v35 = vpop.permute.xlu1 %1403  ;;  %2087 = vmatmul.msk.f32.vlgmr.msrb.gmra.mxu1 %vm265_vm8, %v1469_v11 }
 0xcae   :  { %v1538_v12 = vpop.permute.xlu1 %1537 }
 0xcb6   :  { %v1603_v13 = vpop.permute.xlu1 %1602 }
 0xcb7   :  { %2093 = vmatmul.msk.f32.vlgmr.msra.gmra.mxu1 %vm265_vm8, %v1603_v13 }
 0xcd0   :  { %v1157_v14 = vpop.xlane.xlu0 %1156 }
 0xcd1   :  { %2220 = vrcp.f32 %v1157_v14 }
 0xcd7   :  { %v2221_v15 = vpop.eup %2220  ;;  %v1218_v19 = vpop.xlane.xlu2 %1217 }
 0xcd8   :  { %v1159_v16 = vmul.f32 %v2221_v15, %v2219_v57  ;;  %v1219_v63 = vsub.f32 %v1215_v59, %v1218_v19 }
 0xcda   :  { %2073 = vmatmul.msk.f32.vlgmr.msrb.gmra.mxu0 %vm265_vm8, %v1159_v16  ;;  %v1220_v17 = vmul.f32 1.442695, %v1219_v63 }
 0xcdb   :  { %2083 = vmatpush.xpose.msk.msrb.mxu0 %vm265_vm8, %v1404_v35 }
 0xcdc   :  { %2222 = vpow2.f32 %v1220_v17 }
 0xce1   :  { %v1352_v25 = vpop.xlane.xlu1 %1351 }
 0xce2   :  { %2078 = vmatmul.msk.f32.vlgmr.msra.gmra.mxu0 %vm265_vm8, %v1254_v6  ;;  %v1353_v30 = vsub.f32 %v1349_v4, %v1352_v25  ;;  %v2223_v36 = vpop.eup %2222 }
 0xce3   :  { %2089 = vmatpush.xpose.msk.msra.mxu0 %vm265_vm8, %v1538_v12  ;;  %v1536_v50 = vpop.permute.xlu0 %1535  ;;  %v1222_v38 = vsel %vm265_vm8, %v2223_v36, 0.0 }
 0xce4   :  { %v1354_v33 = vmul.f32 1.442695, %v1353_v30 }
 0xce6   :  { %2224 = vpow2.f32 %v1354_v33 }
 0xcea   :  { %2084 = vmatmul.msk.f32.vlgmr.msrb.gmra.mxu0 %vm265_vm8, %v2920_v53 }
 0xcec   :  { %v2225_v39 = vpop.eup %2224 }
 0xced   :  { %v1356_v42 = vsel %vm265_vm8, %v2225_v39, 0.0 }
 0xcf2   :  { %2090 = vmatmul.msk.f32.vlgmr.msra.gmra.mxu0 %vm265_vm8, %v1536_v50 }
 0xd23   :  { %v1493_v21 = vpop.f32.mrf.mxu1 }
 0xd24   :  { %v1496_v52 = vmul.f32 0.35355338, %v1493_v21 }
 0xd26   :  { %v1497_v27 = vadd.f32 %v1496_v52, %v2720_v8 }
 0xd34   :  { %v1627_v28 = vpop.f32.mrf.mxu1 }
 0xd35   :  { %v1630_v31 = vmul.f32 0.35355338, %v1627_v28 }
 0xd37   :  { %v1631_v34 = vadd.f32 %v1630_v31, %v2720_v8 }
 0xd39   :  { %v1632_v37 = vsel %vm265_vm8, %v1631_v34, -inf }
 0xd57   :  { %v2952_v62 = vpop.f32.mrf.mxu0 }
 0xd5f   :  { %v1278_v0 = vpop.f32.mrf.mxu0 }
 0xd60   :  { %v1281_v20 = vmul.f32 0.35355338, %v1278_v0 }
 0xd62   :  { %v1282_v22 = vadd.f32 %v1281_v20, %v2660_v1  ;;  %v1498_v1 = vsel %vm265_vm8, %v1497_v27, -inf }
 0xd64   :  { %v1283_v23 = vsel %vm265_vm8, %v1282_v22, -inf }
 0xd65   :  { %1284 = vmax.xlane.f32.xlu0 %v1283_v23 }
 0xd67   :  { %v1426_v24 = vpop.f32.mrf.mxu0 }
 0xd68   :  { %v1429_v26 = vmul.f32 0.35355338, %v1426_v24 }
 0xd6a   :  { %v1430_v29 = vadd.f32 %v1429_v26, %v2720_v8 }
 0xd6c   :  { %v1431_v32 = vsel %vm265_vm8, %v1430_v29, -inf }
 0xd6d   :  { %1432 = vmax.xlane.f32.xlu2 %v1431_v32  ;;  %1499 = vmax.xlane.f32.xlu0 %v1498_v1 }
 0xd6f   :  { %v1560_v57 = vpop.f32.mrf.mxu0 }
 0xd70   :  { %v1563_v60 = vmul.f32 0.35355338, %v1560_v57 }
 0xd72   :  { %v1564_v5 = vadd.f32 %v1563_v60, %v2720_v8 }
 0xd74   :  { %v1565_v11 = vsel %vm265_vm8, %v1564_v5, -inf }
 0xd75   :  { %1633 = vmax.xlane.f32.xlu2 %v1632_v37  ;;  %1223 = vadd.xlane.f32.xlu0 %v1222_v38  ;;  %v2096_v38 = vld [vmem:[%s3137_s6 + $0x28] sm:$0xff] }
 0xd7d   :  { %1357 = vadd.xlane.f32.xlu2 %v1356_v42 }
 0xd89   :  { %1227 = vrot.lane.b32.xlu0 %v2881_v18, %s2461_s30 }
 0xd91   :  { %1361 = vrot.lane.b32.xlu0 %v2881_v18, %s2462_s2 }
 0xd95   :  { %1294 = vrot.lane.b32.xlu2 %v2881_v18, %s3176_s4 }
 0xd99   :  { %1442 = vrot.lane.b32.xlu0 %v2920_v53, %s2455_s21  ;;  %s3178_s21 = smov 24  }
 0xd9d   :  { %1509 = vrot.lane.b32.xlu2 %v2920_v53, %s2461_s30 }
 0xda1   :  { %1576 = vrot.lane.b32.xlu0 %v2920_v53, %s3176_s4 }
 0xdd8   :  { %v1285_v43 = vpop.xlane.xlu0 %1284 }
 0xdd9   :  { %v1286_v58 = vsub.f32 %v1282_v22, %v1285_v43 }
 0xddb   :  { %v1287_v2 = vmul.f32 1.442695, %v1286_v58  ;;  %v2159_v58 = vld [vmem:[%s3138_s7 + $0x1] ss:$0 sm:$0xff]  ;;  %s2465_s7 = smov [#allocation13]  }
 0xddc   :  { %s2018_s27 = sshll.u32 %s2465_s7, 4  ;;  %s2019_s27 = int_to_ptr.vmem [resolvable:$true] %s2018_s27 }
 0xde0   :  { %v1433_v45 = vpop.xlane.xlu2 %1432  ;;  %v1500_v46 = vpop.xlane.xlu0 %1499 }
 0xde1   :  { %v1501_v48 = vsub.f32 %v1497_v27, %v1500_v46  ;;  %v1434_v9 = vsub.f32 %v1430_v29, %v1433_v45 }
 0xde3   :  { %v1502_v40 = vmul.f32 1.442695, %v1501_v48  ;;  %v1435_v12 = vmul.f32 1.442695, %v1434_v9 }
 0xde5   :  { %2226 = vpow2.f32 %v1502_v40  ;;  %v2095_v40 = vld [vmem:[%s3137_s6 + $0x20] sm:$0xff] }
 0xde8   :  { %v1634_v44 = vpop.xlane.xlu2 %1633  ;;  %v1224_v55 = vpop.xlane.xlu0 %1223 }
 0xde9   :  { %v1635_v49 = vsub.f32 %v1631_v34, %v1634_v44  ;;  %v2098_v34 = vld [vmem:[%s3137_s6 + $0x38] sm:$0xff] }
 0xdea   :  { %1712 = vmatpush.msrb.mxu0 %v2098_v34 }
 0xdeb   :  { %v1636_v51 = vmul.f32 1.442695, %v1635_v49  ;;  %v2227_v54 = vpop.eup %2226 }
 0xdec   :  { %v1504_v18 = vsel %vm265_vm8, %v2227_v54, 0.0 }
 0xded   :  { %2228 = vpow2.f32 %v1636_v51  ;;  %1505 = vadd.xlane.f32.xlu1 %v1504_v18 }
 0xdee   :  { %2230 = vrcp.f32 %v1224_v55 }
 0xdf0   :  { %v1358_v56 = vpop.xlane.xlu2 %1357 }
 0xdf1   :  { %2232 = vrcp.f32 %v1358_v56 }
 0xdf2   :  { %2234 = vpow2.f32 %v1287_v2 }
 0xdf3   :  { %v2977_v41 = vpop.eup %2228  ;;  %2236 = vpow2.f32 %v1435_v12 }
 0xdf4   :  { %v1638_v59 = vsel %vm265_vm8, %v2977_v41, 0.0  ;;  %v2231_v61 = vpop.eup %2230 }
 0xdf5   :  { %1639 = vadd.xlane.f32.xlu1 %v1638_v59  ;;  %v1226_v6 = vmul.f32 %v2231_v61, %v2223_v36  ;;  %v2097_v36 = vld [vmem:[%s3137_s6 + $0x30] sm:$0xff] }
 0xdf6   :  { %1713 = vmatpush.msrb.mxu0 %v2097_v36 }
 0xdf7   :  { %v2233_v35 = vpop.eup %2232 }
 0xdf8   :  { %v1295_v4 = vpop.permute.xlu2 %1294  ;;  %v2235_v13 = vpop.eup %2234  ;;  %v1360_v14 = vmul.f32 %v2233_v35, %v2225_v39  ;;  %1714 = vmatpush.msrb.mxu0 %v2096_v38 }
 0xdf9   :  { %1315 = vmatpush.msra.mxu2 %v1295_v4  ;;  %v1289_v8 = vsel %vm265_vm8, %v2235_v13, 0.0  ;;  %v2237_v50 = vpop.eup %2236 }
 0xdfa   :  { %v1437_v19 = vsel %vm265_vm8, %v2237_v50, 0.0  ;;  %1715 = vmatpush.msrb.mxu0 %v2095_v40 }
 0xdfb   :  { %v1228_v7 = vpop.permute.xlu0 %1227 }
 0xdfc   :  { %1248 = vmatpush.msra.mxu3 %v1228_v7 }
 0xdfd   :  { %2076 = vmatmul.msk.f32.vlgmr.msra.gmra.mxu3 %vm265_vm8, %v1226_v6  ;;  %1566 = vmax.xlane.f32.xlu1 %v1565_v11 }
 0xe00   :  { %v1510_v16 = vpop.permute.xlu2 %1509 }
 0xe03   :  { %v1362_v15 = vpop.permute.xlu0 %1361 }
 0xe04   :  { %1382 = vmatpush.msrb.mxu3 %v1362_v15 }
 0xe05   :  { %2082 = vmatmul.msk.f32.vlgmr.msrb.gmra.mxu3 %vm265_vm8, %v1360_v14  ;;  %1290 = vadd.xlane.f32.xlu1 %v1289_v8 }
 0xe06   :  { %1530 = vmatpush.msra.mxu3 %v1510_v16 }
 0xe0b   :  { %v1443_v0 = vpop.permute.xlu0 %1442 }
 0xe0c   :  { %1463 = vmatpush.msrb.mxu2 %v1443_v0  ;;  %v2105_v0 = vld [vmem:[%s3141_s10 + $0x30] sm:$0xff] }
 0xe0d   :  { %1438 = vadd.xlane.f32.xlu1 %v1437_v19  ;;  %v2104_v19 = vld [vmem:[%s3141_s10 + $0x28] sm:$0xff] }
 0xe13   :  { %v1577_v31 = vpop.permute.xlu0 %1576 }
 0xe60   :  { %v1506_v20 = vpop.xlane.xlu1 %1505 }
 0xe61   :  { %2238 = vrcp.f32 %v1506_v20 }
 0xe67   :  { %v2239_v21 = vpop.eup %2238 }
 0xe68   :  { %v1508_v22 = vmul.f32 %v2239_v21, %v2227_v54  ;;  %v1640_v63 = vpop.xlane.xlu1 %1639 }
 0xe6a   :  { %2088 = vmatmul.msk.f32.vlgmr.msra.gmra.mxu3 %vm265_vm8, %v1508_v22 }
 0xe70   :  { %v1567_v52 = vpop.xlane.xlu1 %1566 }
 0xe71   :  { %v1568_v23 = vsub.f32 %v1564_v5, %v1567_v52 }
 0xe73   :  { %v1569_v17 = vmul.f32 1.442695, %v1568_v23 }
 0xe75   :  { %2240 = vpow2.f32 %v1569_v17 }
 0xe78   :  { %v1291_v24 = vpop.xlane.xlu1 %1290 }
 0xe79   :  { %2242 = vrcp.f32 %v1291_v24 }
 0xe7b   :  { %v2241_v25 = vpop.eup %2240 }
 0xe7c   :  { %v1571_v26 = vsel %vm265_vm8, %v2241_v25, 0.0 }
 0xe7d   :  { %1572 = vadd.xlane.f32.xlu1 %v1571_v26 }
 0xe7f   :  { %v2243_v27 = vpop.eup %2242 }
 0xe80   :  { %v1250_v28 = vpop.f32.mrf.mxu3  ;;  %v1293_v29 = vmul.f32 %v2243_v27, %v2235_v13  ;;  %v1439_v30 = vpop.xlane.xlu1 %1438 }
 0xe81   :  { %1388 = vrot.lane.b32.xlu2 %v1250_v28, %s3177_s0  ;;  %2244 = vrcp.f32 %v1439_v30 }
 0xe82   :  { %2079 = vmatmul.msk.f32.vlgmr.msra.gmra.mxu2 %vm265_vm8, %v1293_v29 }
 0xe83   :  { %1597 = vmatpush.msra.mxu2 %v1577_v31  ;;  %v2160_v31 = vld [vmem:[#allocation10 + $0x1] ss:$0 sm:$0xff] }
 0xe87   :  { %v2245_v32 = vpop.eup %2244 }
 0xe88   :  { %v1384_v1 = vpop.f32.mrf.mxu3  ;;  %v1441_v33 = vmul.f32 %v2245_v32, %v2237_v50  ;;  %v2106_v50 = vld [vmem:[%s3141_s10 + $0x38] sm:$0xff] }
 0xe89   :  { %1396 = vrot.lane.b32.xlu2 %v1384_v1, %s3178_s21 }
 0xe8a   :  { %2085 = vmatmul.msk.f32.vlgmr.msrb.gmra.mxu2 %vm265_vm8, %v1441_v33  ;;  %v2161_v33 = vld [vmem:[%s3140_s9 + $0x1] ss:$0 sm:$0xff] }
 0xe8b   :  { %1811 = vmatpush.msrb.mxu2 %v2106_v50  ;;  %v2163_v50 = vld [vmem:[%s3144_s13 + $0x1] ss:$0 sm:$0xff] }
 0xe8d   :  { %1812 = vmatpush.msrb.mxu2 %v2105_v0 }
 0xe8f   :  { %1813 = vmatpush.msrb.mxu2 %v2104_v19 }
 0xe96   :  { %1643 = vrot.lane.b32.xlu1 %v2920_v53, %s2462_s2  ;;  %s3179_s2 = smov 16  }
 0xedb   :  { %v1389_v44 = vpop.permute.xlu2 %1388 }
 0xedc   :  { %v1399_v51 = vsel %vm265_vm8, %v2952_v62, %v1389_v44 }
 0xee3   :  { %v1397_v18 = vpop.permute.xlu2 %1396 }
 0xeed   :  { %v1532_v48 = vpop.f32.mrf.mxu3 }
 0xef0   :  { %v1573_v37 = vpop.xlane.xlu1 %1572 }
 0xef1   :  { %2246 = vrcp.f32 %v1573_v37 }
 0xef2   :  { %2248 = vrcp.f32 %v1640_v63 }
 0xef7   :  { %v2247_v39 = vpop.eup %2246 }
 0xef8   :  { %v1575_v42 = vmul.f32 %v2247_v39, %v2241_v25  ;;  %v2249_v53 = vpop.eup %2248  ;;  %v2117_v39 = vld [vmem:[%s3143_s12 + $0x78] sm:$0xff] }
 0xef9   :  { %v1642_v45 = vmul.f32 %v2249_v53, %v2977_v41  ;;  %1868 = vmatpush.msrb.mxu1 %v2117_v39  ;;  %v2116_v53 = vld [vmem:[%s3143_s12 + $0x70] sm:$0xff] }
 0xefa   :  { %2091 = vmatmul.msk.f32.vlgmr.msra.gmra.mxu2 %vm265_vm8, %v1575_v42 }
 0xefb   :  { %1869 = vmatpush.msrb.mxu1 %v2116_v53  ;;  %v1950_v53 = vld [vmem:[%s3147_s16 + $0x10] sm:$0xff] }
 0xf05   :  { %v1317_v43 = vpop.f32.mrf.mxu2 }
 0xf06   :  { %1392 = vrot.lane.b32.xlu0 %v1317_v43, %s3179_s2  ;;  %v2115_v43 = vld [vmem:[%s3143_s12 + $0x68] sm:$0xff] }
 0xf07   :  { %1870 = vmatpush.msrb.mxu1 %v2115_v43 }
 0xf08   :  { %v1644_v46 = vpop.permute.xlu1 %1643 }
 0xf09   :  { %1664 = vmatpush.msrb.mxu3 %v1644_v46  ;;  %v2113_v46 = vld [vmem:[%s3143_s12 + $0x58] sm:$0xff] }
 0xf0a   :  { %2094 = vmatmul.msk.f32.vlgmr.msrb.gmra.mxu3 %vm265_vm8, %v1642_v45  ;;  %v2114_v45 = vld [vmem:[%s3143_s12 + $0x60] sm:$0xff] }
 0xf0b   :  { %1871 = vmatpush.msrb.mxu1 %v2114_v45  ;;  %v1949_v45 = vld [vmem:[%s3147_s16 + $0x8] sm:$0xff] }
 0xf0d   :  { %v1465_v49 = vpop.f32.mrf.mxu2  ;;  %1872 = vmatpush.msrb.mxu1 %v2113_v46  ;;  %v1948_v46 = vld [vmem:[%s3147_s16] sm:$0xff] }
 0xf0e   :  { %1670 = vrot.lane.b32.xlu0 %v1532_v48, %s3177_s0  ;;  %v2112_v48 = vld [vmem:[%s3143_s12 + $0x50] sm:$0xff] }
 0xf0f   :  { %1873 = vmatpush.msrb.mxu1 %v2112_v48 }
 0xf78   :  { %v1393_v54 = vpop.permute.xlu0 %1392 }
 0xf79   :  { %v1400_v55 = vsel %vm544_vm9, %v1399_v51, %v1393_v54  ;;  %v2110_v54 = vld [vmem:[%s3143_s12 + $0x40] sm:$0xff] }
 0xf7a   :  { %v1401_v56 = vsel %vm546_vm10, %v1400_v55, %v1397_v18 }
 0xf7b   :  { %2100 = vmatmul.msk.f32.vlgmr.msrb.gmra.mxu0 %vm163_vm0, %v1401_v56 }
 0xf7d   :  { %v1599_v57 = vpop.f32.mrf.mxu2 }
 0xf7e   :  { %1674 = vrot.lane.b32.xlu2 %v1599_v57, %s3179_s2 }
 0xf80   :  { %v1671_v59 = vpop.permute.xlu0 %1670 }
 0xf81   :  { %v1681_v5 = vsel %vm265_vm8, %v1465_v49, %v1671_v59  ;;  %v2111_v49 = vld [vmem:[%s3143_s12 + $0x48] sm:$0xff] }
 0xf82   :  { %1874 = vmatpush.msrb.mxu1 %v2111_v49 }
 0xf84   :  { %1875 = vmatpush.msrb.mxu1 %v2110_v54 }
 0xf8d   :  { %v1666_v41 = vpop.f32.mrf.mxu3 }
 0xf8e   :  { %1678 = vrot.lane.b32.xlu0 %v1666_v41, %s3178_s21  ;;  %v2162_v41 = vld [vmem:[%s3142_s11 + $0x1] ss:$0 sm:$0xff]  ;;  %s2020_s11 = sshll.u32 %s3181_s28, 4  ;;  %s2021_s11 = int_to_ptr.hbm [resolvable:$true] %s2020_s11 }
 0xfd8   :  { %v1675_v2 = vpop.permute.xlu2 %1674 }
 0xfd9   :  { %v1682_v6 = vsel %vm544_vm9, %v1681_v5, %v1675_v2 }
 0xff8   :  { %v1717_v62 = vpop.f32.mrf.mxu0 }
 0xff9   :  { %v1718_v60 = vadd.f32 %v2159_v58, %v1717_v62 }
 0xffb   :  { %v1723_v61 = vadd.f32 %v1718_v60, %v2875_v3 }
 0xffd   :  { %v1729_v4 = vsel %vm163_vm0, %v1723_v61, 0.0 }
 0xffe   :  { %1730 = vadd.xlane.f32.xlu1 %v1729_v4 }
0x1000   :  { %v1679_v7 = vpop.permute.xlu0 %1678 }
0x1001   :  { %v1683_v9 = vsel %vm546_vm10, %v1682_v6, %v1679_v7 }
0x1002   :  { %2101 = vmatmul.msk.f32.gmra.mxu0 %vm163_vm0, %v1683_v9 }
0x1071   :  { %v1731_v11 = vpop.xlane.xlu1 %1730 }
0x1072   :  { %v1735_v35 = vmul.f32 %v1731_v11, %v2601_v10 }
0x1074   :  { %v1737_v12 = vsub.f32 %v1723_v61, %v1735_v35 }
0x1076   :  { %v1739_v13 = vmul.f32 %v1737_v12, %v1737_v12 }
0x1078   :  { %v1741_v3 = vsel %vm163_vm0, %v1739_v13, 0.0 }
0x1079   :  { %1742 = vadd.xlane.f32.xlu0 %v1741_v3 }
0x107f   :  { %v1720_v14 = vpop.f32.mrf.mxu0 }
0x1080   :  { %v1721_v15 = vadd.f32 %v2159_v58, %v1720_v14 }
0x1082   :  { %v1724_v16 = vadd.f32 %v1721_v15, %v2913_v47  ;;  %v2103_v47 = vld [vmem:[%s3141_s10 + $0x20] sm:$0xff] }
0x1083   :  { %1814 = vmatpush.msrb.mxu2 %v2103_v47 }
0x1084   :  { %v1732_v8 = vsel %vm163_vm0, %v1724_v16, 0.0 }
0x1085   :  { %1733 = vadd.xlane.f32.xlu2 %v1732_v8 }
0x10ec   :  { %v1743_v20 = vpop.xlane.xlu0 %1742 }
0x10ed   :  { %v1747_v21 = vmul.f32 %v1743_v20, %v2601_v10 }
0x10ef   :  { %v1749_v22 = vadd.f32 1e-12, %v1747_v21 }
0x10f1   :  { %2250 = vrsqrt.f32 %v1749_v22  ;;  %vm1757_vm9 = vweird.f32 %v1749_v22 }
0x10f7   :  { %v2251_v63 = vpop.eup %2250 }
0x10f8   :  { %v1752_v52 = vmul.f32 %v2251_v63, %v1749_v22  ;;  %v1734_v23 = vpop.xlane.xlu2 %1733  ;;  %vm1758_vm8 = vweird.f32 %v2251_v63 }
0x10f9   :  { %v1736_v17 = vmul.f32 %v1734_v23, %v2601_v10  ;;  %vm1759_vm10 = vmor %vm1757_vm9, %vm1758_vm8 }
0x10fa   :  { %v1753_v24 = vmul.f32 %v2251_v63, %v1752_v52 }
0x10fb   :  { %v1738_v25 = vsub.f32 %v1724_v16, %v1736_v17 }
0x10fc   :  { %v1754_v26 = vmul.f32 0.5, %v1753_v24 }
0x10fd   :  { %v1740_v27 = vmul.f32 %v1738_v25, %v1738_v25 }
0x10fe   :  { %v1755_v28 = vsub.f32 1.5, %v1754_v26 }
0x10ff   :  { %v1744_v29 = vsel %vm163_vm0, %v1740_v27, 0.0 }
0x1100   :  { %v1756_v30 = vmul.f32 %v2251_v63, %v1755_v28  ;;  %1745 = vadd.xlane.f32.xlu2 %v1744_v29 }
0x1102   :  { %v1760_v32 = vsel %vm1759_vm10, %v2251_v63, %v1756_v30 }
0x1103   :  { %v1771_v1 = vmul.f32 %v1760_v32, %v1737_v12 }
0x1105   :  { %v1776_v34 = vmul.f32 %v2160_v31, %v1771_v1 }
0x1107   :  { %v1781_v36 = vadd.f32 %v2161_v33, %v1776_v34 }
0x1109   :  { %2108 = vmatmul.msk.f32.vlgmr.msrb.gmra.mxu2 %vm163_vm0, %v1781_v36 }
0x1173   :  { %v1746_v37 = vpop.xlane.xlu2 %1745 }
0x1174   :  { %v1748_v38 = vmul.f32 %v1746_v37, %v2601_v10 }
0x1176   :  { %v1750_v42 = vadd.f32 1e-12, %v1748_v38 }
0x1178   :  { %2252 = vrsqrt.f32 %v1750_v42  ;;  %vm1767_vm13 = vweird.f32 %v1750_v42 }
0x117e   :  { %v2253_v40 = vpop.eup %2252 }
0x117f   :  { %v1762_v44 = vmul.f32 %v2253_v40, %v1750_v42  ;;  %vm1768_vm12 = vweird.f32 %v2253_v40  ;;  %v1951_v42 = vld [vmem:[%s3147_s16 + $0x18] sm:$0xff] }
0x1180   :  { %vm1769_vm15 = vmor %vm1767_vm13, %vm1768_vm12  ;;  %1971 = vmatpush.msra.mxu3 %v1951_v42 }
0x1181   :  { %v1763_v51 = vmul.f32 %v2253_v40, %v1762_v44 }
0x1182   :  { %1972 = vmatpush.msra.mxu3 %v1950_v53 }
0x1183   :  { %v1764_v18 = vmul.f32 0.5, %v1763_v51 }
0x1184   :  { %1973 = vmatpush.msra.mxu3 %v1949_v45 }
0x1185   :  { %v1765_v55 = vsub.f32 1.5, %v1764_v18 }
0x1186   :  { %1974 = vmatpush.msra.mxu3 %v1948_v46 }
0x1187   :  { %v1766_v56 = vmul.f32 %v2253_v40, %v1765_v55 }
0x1189   :  { %v1770_v57 = vsel %vm1769_vm15, %v2253_v40, %v1766_v56 }
0x118a   :  { %v1772_v58 = vmul.f32 %v1770_v57, %v1738_v25 }
0x118c   :  { %v1816_v59 = vpop.f32.mrf.mxu2  ;;  %v1777_v62 = vmul.f32 %v2160_v31, %v1772_v58 }
0x118d   :  { %v1817_v60 = vadd.f32 %v2162_v41, %v1816_v59 }
0x118e   :  { %v1782_v61 = vadd.f32 %v2161_v33, %v1777_v62 }
0x118f   :  { %v1824_v2 = vmul.f32 0.044715, %v1817_v60  ;;  %v1822_v11 = vmul.f32 0.5, %v1817_v60 }
0x1190   :  { %2109 = vmatmul.msk.f32.gmra.mxu2 %vm163_vm0, %v1782_v61 }
0x1191   :  { %v1826_v4 = vmul.f32 %v1824_v2, %v1817_v60 }
0x1193   :  { %v1828_v5 = vmul.f32 %v1826_v4, %v1817_v60 }
0x1195   :  { %v1830_v6 = vadd.f32 %v1828_v5, %v1817_v60 }
0x1197   :  { %v1832_v7 = vmul.f32 0.7978846, %v1830_v6 }
0x1199   :  { %2254 = vtanh.f32 %v1832_v7  ;;  %v2165_v7 = vld [vmem:[%s3146_s15 + $0x1] ss:$0 sm:$0xff] }
0x119f   :  { %v2255_v9 = vpop.eup %2254 }
0x11a0   :  { %v1836_v35 = vadd.f32 1.0, %v2255_v9 }
0x11a2   :  { %v1838_v12 = vmul.f32 %v1836_v35, %v1822_v11 }
0x11a4   :  { %2119 = vmatmul.msk.f32.vlgmr.msrb.gmra.mxu1 %vm993_vm14, %v1838_v12 }
0x1213   :  { %v1819_v13 = vpop.f32.mrf.mxu2 }
0x1214   :  { %v1820_v3 = vadd.f32 %v2162_v41, %v1819_v13  ;;  %v1983_v13 = vld [vmem:[%s3149_s18 + $0x18] sm:$0xff] }
0x1215   :  { %2003 = vmatpush.msrb.mxu3 %v1983_v13 }
0x1216   :  { %v1825_v14 = vmul.f32 0.044715, %v1820_v3  ;;  %v1823_v63 = vmul.f32 0.5, %v1820_v3 }
0x1218   :  { %v1827_v15 = vmul.f32 %v1825_v14, %v1820_v3  ;;  %v1981_v14 = vld [vmem:[%s3149_s18 + $0x8] sm:$0xff] }
0x121a   :  { %v1829_v16 = vmul.f32 %v1827_v15, %v1820_v3  ;;  %v1980_v15 = vld [vmem:[%s3149_s18] sm:$0xff] }
0x121c   :  { %v1831_v8 = vadd.f32 %v1829_v16, %v1820_v3  ;;  %v1982_v3 = vld [vmem:[%s3149_s18 + $0x10] sm:$0xff]  ;;  %v2166_v16 = vld [vmem:[%s3148_s17] ss:$0 sm:$0xff] }
0x121d   :  { %2004 = vmatpush.msrb.mxu3 %v1982_v3 }
0x121e   :  { %v1833_v0 = vmul.f32 0.7978846, %v1831_v8 }
0x121f   :  { %2005 = vmatpush.msrb.mxu3 %v1981_v14 }
0x1220   :  { %2256 = vtanh.f32 %v1833_v0 }
0x1221   :  { %v1877_v19 = vpop.f32.mrf.mxu1  ;;  %2006 = vmatpush.msrb.mxu3 %v1980_v15 }
0x1222   :  { %v1878_v47 = vadd.f32 %v2163_v50, %v1877_v19  ;;  %v2167_v19 = vld [vmem:[%s3180_s26] ss:$0 sm:$0xff] }
0x1224   :  { %v1883_v20 = vadd.f32 %v1878_v47, %v1781_v36 }
0x1226   :  { %v2257_v21 = vpop.eup %2256  ;;  %v1889_v22 = vsel %vm163_vm0, %v1883_v20, 0.0 }
0x1227   :  { %1890 = vadd.xlane.f32.xlu0 %v1889_v22  ;;  %v1837_v52 = vadd.f32 1.0, %v2257_v21 }
0x1229   :  { %v1839_v23 = vmul.f32 %v1837_v52, %v1823_v63 }
0x122b   :  { %2120 = vmatmul.msk.f32.gmra.mxu1 %vm993_vm14, %v1839_v23 }
0x129a   :  { %v1891_v17 = vpop.xlane.xlu0 %1890 }
0x129b   :  { %v1895_v25 = vmul.f32 %v1891_v17, %v2601_v10 }
0x129d   :  { %v1897_v28 = vsub.f32 %v1883_v20, %v1895_v25 }
0x129f   :  { %v1899_v30 = vmul.f32 %v1897_v28, %v1897_v28 }
0x12a1   :  { %v1901_v31 = vsel %vm163_vm0, %v1899_v30, 0.0 }
0x12a8   :  { %v1880_v24 = vpop.f32.mrf.mxu1 }
0x12a9   :  { %v1881_v26 = vadd.f32 %v2163_v50, %v1880_v24 }
0x12ab   :  { %v1884_v27 = vadd.f32 %v1881_v26, %v1782_v61  ;;  %v2164_v61 = vld [vmem:[#allocation11 + $0x1] ss:$0 sm:$0xff] }
0x12ad   :  { %v1892_v29 = vsel %vm163_vm0, %v1884_v27, 0.0 }
0x12ae   :  { %1893 = vadd.xlane.f32.xlu1 %v1892_v29 }
0x12b6   :  { %1902 = vadd.xlane.f32.xlu1 %v1901_v31 }
0x1321   :  { %v1894_v32 = vpop.xlane.xlu1 %1893 }
0x1322   :  { %v1896_v1 = vmul.f32 %v1894_v32, %v2601_v10 }
0x1324   :  { %v1898_v33 = vsub.f32 %v1884_v27, %v1896_v1 }
0x1326   :  { %v1900_v34 = vmul.f32 %v1898_v33, %v1898_v33 }
0x1328   :  { %v1904_v36 = vsel %vm163_vm0, %v1900_v34, 0.0 }
0x1329   :  { %1905 = vadd.xlane.f32.xlu2 %v1904_v36  ;;  %v1903_v37 = vpop.xlane.xlu1 %1902 }
0x132a   :  { %v1907_v38 = vmul.f32 %v1903_v37, %v2601_v10 }
0x132c   :  { %v1909_v39 = vadd.f32 1e-12, %v1907_v38 }
0x132e   :  { %2258 = vrsqrt.f32 %v1909_v39  ;;  %vm1917_vm1 = vweird.f32 %v1909_v39 }
0x1334   :  { %v2259_v43 = vpop.eup %2258 }
0x1335   :  { %v1912_v48 = vmul.f32 %v2259_v43, %v1909_v39  ;;  %vm1918_vm14 = vweird.f32 %v2259_v43 }
0x1336   :  { %vm1919_vm2 = vmor %vm1917_vm1, %vm1918_vm14 }
0x1337   :  { %v1913_v49 = vmul.f32 %v2259_v43, %v1912_v48 }
0x1339   :  { %v1914_v54 = vmul.f32 0.5, %v1913_v49 }
0x133b   :  { %v1915_v18 = vsub.f32 1.5, %v1914_v54 }
0x133d   :  { %v1916_v57 = vmul.f32 %v2259_v43, %v1915_v18 }
0x133f   :  { %v1920_v59 = vsel %vm1919_vm2, %v2259_v43, %v1916_v57 }
0x139c   :  { %v1906_v40 = vpop.xlane.xlu2 %1905 }
0x139d   :  { %v1908_v44 = vmul.f32 %v1906_v40, %v2601_v10  ;;  %v1931_v10 = vmul.f32 %v1920_v59, %v1897_v28 }
0x139f   :  { %v1910_v51 = vadd.f32 1e-12, %v1908_v44  ;;  %v1936_v5 = vmul.f32 %v2164_v61, %v1931_v10 }
0x13a1   :  { %2260 = vrsqrt.f32 %v1910_v51  ;;  %vm1927_vm4 = vweird.f32 %v1910_v51  ;;  %v1941_v11 = vadd.f32 %v2165_v7, %v1936_v5 }
0x13a7   :  { %v2261_v55 = vpop.eup %2260 }
0x13a8   :  { %v1922_v56 = vmul.f32 %v2261_v55, %v1910_v51  ;;  %vm1928_vm3 = vweird.f32 %v2261_v55 }
0x13a9   :  { %vm1929_vm5 = vmor %vm1927_vm4, %vm1928_vm3 }
0x13aa   :  { %v1923_v41 = vmul.f32 %v2261_v55, %v1922_v56 }
0x13ac   :  { %v1924_v58 = vmul.f32 0.5, %v1923_v41 }
0x13ae   :  { %v1925_v62 = vsub.f32 1.5, %v1924_v58 }
0x13b0   :  { %v1926_v60 = vmul.f32 %v2261_v55, %v1925_v62 }
0x13b2   :  { %v1930_v2 = vsel %vm1929_vm5, %v2261_v55, %v1926_v60 }
0x13b3   :  { %v1932_v4 = vmul.f32 %v1930_v2, %v1898_v33 }
0x13b5   :  { %v1937_v6 = vmul.f32 %v2164_v61, %v1932_v4 }
0x13b7   :  { %v1942_v9 = vadd.f32 %v2165_v7, %v1937_v6 }
0x13b9   :  { %v1944_v35 = vrot.slane %v1942_v9, 7 }
0x13bb   :  { %v1947_v12 = vsel %vm1946_vm6, %v1941_v11, %v1944_v35 }
0x13bc   :  { %2122 = vmatmul.msk.f32.vlgmr.msra.gmra.mxu3 %vm163_vm0, %v1947_v12 }
0x143f   :  { %v1976_v8 = vpop.f32.mrf.mxu3 }
0x1440   :  { %v1977_v50 = vadd.f32 %v2166_v16, %v1976_v8 }
0x1442   :  { %2262 = vtanh.f32 %v1977_v50 }
0x1448   :  { %v2263_v0 = vpop.eup %2262 }
0x1449   :  { %2123 = vmatmul.msk.f32.vlgmr.msrb.gmra.mxu3 %vm163_vm0, %v2263_v0 }
0x14cc   :  { %v2008_v47 = vpop.f32.mrf.mxu3 }
0x14cd   :  { %v2009_v20 = vadd.f32 %v2167_v19, %v2008_v47 }
0x14cf   :  { %2012 = vst.msk [vmem:[#allocation13] sm:$0x3] %vm2011_vm7, %v2009_v20 }
0x14d0   :  { %2023 = dma.vmem_to_hbm [thread:$0]  %s2019_s27, 32, %s2021_s11, [#allocation4]  }
0x14d1   :  { %2440 = dma.done.wait [#allocation4], 32  }
0x14d2   :  { %2441 = vsyncadd [#allocation4], 4294967264 }
0x14d3   :  { %2028 = vsyncpa [#allocation3], 1 }
0x14d4   :  { %2029 = vsyncpa [#allocation6], 1 }
0x14d5   :  { %2030 = vsyncpa [#allocation9], 1 }
0x14d6   :  { %2031 = vsyncpa [#allocation12], 1 }
0x14d7   :  { %2032 = vsyncpa [#allocation4], 1 }

</bundles_post_ra>
